<compile_context>
chip_gen: v5e
topology: v5e:2x2
jax: 0.10.0
libtpu: 0.0.40
codegen_flags: <defaults>
</compile_context>

<pallas_src>
import functools

import jax
import jax.numpy as jnp
import numpy as np
from jax.experimental import pallas as pl
from jax.experimental.pallas import tpu as pltpu


def _round_up(x, m):
    return -(-x // m) * m


def _single_tensorcore():
    """True on v5e/v6e-style single-TensorCore chips (fold batch into 1 step)."""
    try:
        kind = jax.devices()[0].device_kind.lower()
    except Exception:
        return False
    return any(t in kind for t in ("v5e", "v5 lite", "v5lite",
                                   "v6e", "v6 lite", "v6lite"))


def _fused_conv_kernel(x_ref, w1_ref, s1_ref, w2_ref, s2_ref, o_ref, pad_ref,
                       *, H, W, KH, KW, P, S, NB):
    """Fused [conv5x5 -> BN -> ReLU] x 2 for NB batch elements.

    Layout: channels on sublanes, flattened spatial (row stride S) on lanes.

    x_ref:   (NB, Cin_p, Lin)  reflect-padded layer-1 input, rows at stride S,
                               zero tail (f32; Cin zero-padded to Cin_p)
    w1_ref:  (Cout, KH*KW*Cin_p)  dense im2col weights, BN1 scale folded (bf16)
    s1_ref:  (Cout, 1)            BN1 shift (f32)
    w2_ref:  (Cout, KH*KW*Cout)   dense im2col weights, BN2 scale folded (bf16)
    s2_ref:  (Cout, 1)            BN2 shift (f32)
    o_ref:   (NB, Cout, Lo)       layer-2 output, padded-width domain (cols >= W
                                  of each row are garbage; wrapper strips them)
    pad_ref: (Cout, Lin) VMEM     reflect-padded layer-1 output scratch (f32)
    """
    Lo = H * S
    Hp = H + 2 * P
    Cout = o_ref.shape[1]
    Lin = pad_ref.shape[1]

    w1 = w1_ref[...]                       # (Cout, KH*KW*Cin_p) bf16
    w2 = w2_ref[...]                       # (Cout, KH*KW*Cout)  bf16
    sh1 = s1_ref[...]                      # (Cout, 1) f32
    sh2 = s2_ref[...]                      # (Cout, 1) f32

    # Column-in-row index and reflect masks: built ONCE (hoisted out of loops).
    col = jax.lax.broadcasted_iota(jnp.int32, (Cout, Lo), 1) % S
    left_m = [col == t for t in range(P)]              # left pad columns
    right_m = [col == (W + P + t) for t in range(P)]   # right pad columns

    taps = [i * S + j for i in range(KH) for j in range(KW)]

    def im2col(a):
        # a: (C, Lin) f32 -> (KH*KW*C, Lo) bf16; slices are lane windows, the
        # sublane concat is tile-aligned (C is a multiple of 8 in f32).
        return jnp.concatenate([a[:, d:d + Lo] for d in taps],
                               axis=0).astype(jnp.bfloat16)

    # Zero the scratch tail once (only garbage output columns ever read it).
    if Lin > Hp * S:
        pad_ref[:, Hp * S:] = jnp.zeros((Cout, Lin - Hp * S), pad_ref.dtype)

    for b in range(NB):
        # -------- layer 1: single big-K bf16 matmul + BN shift + ReLU --------
        x = x_ref[b]                                       # (Cin_p, Lin) f32
        y1 = jnp.dot(w1, im2col(x), preferred_element_type=jnp.float32)
        y1 = jnp.maximum(y1 + sh1, 0.0)                    # (Cout, Lo) f32

        # -------- bake each row's full horizontally-padded width in registers
        # y1g row r, col c (c in [0,S)):
        #   c in [P, P+W)   -> y1[r, c-P]        (interior)
        #   c in [0, P)     -> y1[r, P-c]        (left reflect)
        #   c in [W+P, Wp)  -> y1[r, 2W-2+P-c]   (right reflect)
        y1g = pltpu.roll(y1, P, axis=1)
        for t in range(P):
            ls = (2 * t - P) % Lo
            lsrc = y1 if ls == 0 else pltpu.roll(y1, ls, axis=1)
            y1g = jnp.where(left_m[t], lsrc, y1g)
            y1g = jnp.where(right_m[t], pltpu.roll(y1, P + 2 * t + 2, axis=1),
                            y1g)

        # -------- assemble padded layer-1 output in VMEM.
        # All writes are sourced from registers and complete before any read.
        pad_ref[:, P * S:P * S + Lo] = y1g                       # data rows
        for r in range(P):                                       # top rows
            pad_ref[:, r * S:(r + 1) * S] = \
                y1g[:, (P - r) * S:(P - r + 1) * S]
        for i in range(P):                                       # bottom rows
            pad_ref[:, (H + P + i) * S:(H + P + i + 1) * S] = \
                y1g[:, (H - 2 - i) * S:(H - 1 - i) * S]

        # -------- layer 2: same big-K matmul on the padded scratch -----------
        z = pad_ref[...]                                   # (Cout, Lin) f32
        y2 = jnp.dot(w2, im2col(z), preferred_element_type=jnp.float32)
        y2 = jnp.maximum(y2 + sh2, 0.0)
        o_ref[b] = y2.astype(o_ref.dtype)


def fold_bn(bias, gamma, beta, mean, var, eps=1e-5):
    scale = gamma / jnp.sqrt(var + eps)
    shift = (bias - mean) * scale + beta
    return scale, shift


def conv_module_forward(x_nchw, params, kersz=5):
    """Equivalent of Conv(C_in, C_out).forward(x) in eval mode. x: NCHW f32."""
    N, Cin, H, W = x_nchw.shape
    KH = KW = kersz
    P = kersz // 2
    Hp, Wp = H + 2 * P, W + 2 * P
    Cout = params["w1"].shape[0]

    S = _round_up(Wp, 8)                       # flat row stride (Lo = H*S is a
    Lo = H * S                                 # multiple of 128 when H % 16 == 0)
    Lin = _round_up(Hp * S + (KW - 1), 128)    # flat padded-input length
    Cin_p = _round_up(Cin, 8)                  # sublane-aligned channel count

    # Fold BN scale into the conv weights; keep the shift for the epilogue.
    s1, sh1 = fold_bn(params["b1"], params["g1"], params["be1"],
                      params["m1"], params["v1"])
    s2, sh2 = fold_bn(params["b2"], params["g2"], params["be2"],
                      params["m2"], params["v2"])
    w1 = params["w1"] * s1[:, None, None, None]            # (Cout, Cin, KH, KW)
    w2 = params["w2"] * s2[:, None, None, None]            # (Cout, Cout, KH, KW)
    w1 = jnp.pad(w1, ((0, 0), (0, Cin_p - Cin), (0, 0), (0, 0)))
    # Dense im2col weights, tap-major then channel: col = (i*KW + j)*C + c.
    W1 = jnp.transpose(w1, (0, 2, 3, 1)).reshape(
        Cout, KH * KW * Cin_p).astype(jnp.bfloat16)
    W2 = jnp.transpose(w2, (0, 2, 3, 1)).reshape(
        Cout, KH * KW * Cout).astype(jnp.bfloat16)

    # Reflect-pad the layer-1 input (cheap XLA glue), embed rows at stride S,
    # flatten, pad the flat tail and the channel axis.
    xp = jnp.pad(x_nchw, ((0, 0), (0, 0), (P, P), (P, P)), mode="reflect")
    xp = jnp.pad(xp, ((0, 0), (0, Cin_p - Cin), (0, 0), (0, S - Wp)))
    xf = jnp.pad(xp.reshape(N, Cin_p, Hp * S), ((0, 0), (0, 0), (0, Lin - Hp * S)))
    xf = xf.astype(jnp.float32)

    # Single-TC chips: whole batch in one grid step. Multi-TC: parallel grid.
    NB = N if _single_tensorcore() else 1
    grid = (N // NB,)

    kernel = functools.partial(_fused_conv_kernel,
                               H=H, W=W, KH=KH, KW=KW, P=P, S=S, NB=NB)

    out_flat = pl.pallas_call(
        kernel,
        out_shape=jax.ShapeDtypeStruct((N, Cout, Lo), jnp.float32),
        grid_spec=pltpu.PrefetchScalarGridSpec(
            num_scalar_prefetch=0,
            grid=grid,
            in_specs=[
                pl.BlockSpec((NB, Cin_p, Lin), lambda n: (n, 0, 0)),
                pl.BlockSpec((Cout, KH * KW * Cin_p), lambda n: (0, 0)),
                pl.BlockSpec((Cout, 1), lambda n: (0, 0)),
                pl.BlockSpec((Cout, KH * KW * Cout), lambda n: (0, 0)),
                pl.BlockSpec((Cout, 1), lambda n: (0, 0)),
            ],
            out_specs=pl.BlockSpec((NB, Cout, Lo), lambda n: (n, 0, 0)),
            scratch_shapes=[pltpu.VMEM((Cout, Lin), jnp.float32)],
        ),
        compiler_params=pltpu.CompilerParams(
            dimension_semantics=("parallel",)),
    )(xf, W1, sh1.reshape(Cout, 1).astype(jnp.float32),
      W2, sh2.reshape(Cout, 1).astype(jnp.float32))

    # Strip the S-W garbage columns of each row (wrapper-side layout plumbing).
    return out_flat.reshape(N, Cout, H, S)[:, :, :, :W]


def reference_forward(x_nchw, params, kersz=5, eps=1e-5):
    """Pure-JAX reference with the same bf16 quantization points as the kernel."""
    P = kersz // 2

    def block(x, w, b, g, be, m, v):
        scale = g / jnp.sqrt(v + eps)
        shift = (b - m) * scale + be
        wq = (w * scale[:, None, None, None]).astype(jnp.bfloat16)
        xq = x.astype(jnp.bfloat16)
        xp = jnp.pad(xq, ((0, 0), (0, 0), (P, P), (P, P)), mode="reflect")
        y = jax.lax.conv_general_dilated(
            xp, wq, (1, 1), "VALID",
            dimension_numbers=("NCHW", "OIHW", "NCHW"),
            preferred_element_type=jnp.float32)
        y = y + shift[None, :, None, None]
        return jnp.maximum(y, 0.0)

    x = block(x_nchw, params["w1"], params["b1"], params["g1"], params["be1"],
              params["m1"], params["v1"])
    x = block(x, params["w2"], params["b2"], params["g2"], params["be2"],
              params["m2"], params["v2"])
    return x


def init_params(key, c_in, c_out, kersz=5):
    ks = jax.random.split(key, 12)
    f32 = jnp.float32
    return {
        "w1": 0.1 * jax.random.normal(ks[0], (c_out, c_in, kersz, kersz), f32),
        "b1": 0.1 * jax.random.normal(ks[1], (c_out,), f32),
        "g1": 1.0 + 0.1 * jax.random.normal(ks[2], (c_out,), f32),
        "be1": 0.1 * jax.random.normal(ks[3], (c_out,), f32),
        "m1": 0.1 * jax.random.normal(ks[4], (c_out,), f32),
        "v1": 0.5 + jnp.abs(jax.random.normal(ks[5], (c_out,), f32)),
        "w2": 0.1 * jax.random.normal(ks[6], (c_out, c_out, kersz, kersz), f32),
        "b2": 0.1 * jax.random.normal(ks[7], (c_out,), f32),
        "g2": 1.0 + 0.1 * jax.random.normal(ks[8], (c_out,), f32),
        "be2": 0.1 * jax.random.normal(ks[9], (c_out,), f32),
        "m2": 0.1 * jax.random.normal(ks[10], (c_out,), f32),
        "v2": 0.5 + jnp.abs(jax.random.normal(ks[11], (c_out,), f32)),
    }


if __name__ == "__main__":
    key = jax.random.PRNGKey(0)
    k_x, k_p = jax.random.split(key)

    N, C_in, H, W = 2, 4, 16, 16
    C_out, kersz = 8, 5

    x = jax.random.normal(k_x, (N, C_in, H, W), jnp.float32)  # NCHW like PyTorch
    params = init_params(k_p, C_in, C_out, kersz)

    out = jax.block_until_ready(conv_module_forward(x, params, kersz=kersz))
    ref = jax.block_until_ready(reference_forward(x, params, kersz=kersz))

    np.testing.assert_allclose(np.asarray(out), np.asarray(ref),
                               rtol=1e-2, atol=1e-2)
    assert out.shape == (N, C_out, H, W)

    print("KERNEL_OK")
</pallas_src>

<mosaic_0001>
module attributes {stable_mosaic.version = 11 : i64} {
  func.func @_fused_conv_kernel(%arg0: i32, %arg1: memref<1x8x512xf32, #tpu.memory_space<vmem>>, %arg2: memref<8x200xbf16, #tpu.memory_space<vmem>>, %arg3: memref<8x1xf32, #tpu.memory_space<vmem>>, %arg4: memref<8x200xbf16, #tpu.memory_space<vmem>>, %arg5: memref<8x1xf32, #tpu.memory_space<vmem>>, %arg6: memref<1x8x384xf32, #tpu.memory_space<vmem>>, %arg7: memref<8x512xf32, #tpu.memory_space<vmem>>) attributes {dimension_semantics = [#tpu.dimension_semantics<parallel>], iteration_bounds = array<i64: 2>, scalar_prefetch = 0 : i64, scratch_operands = 1 : i64, tpu.core_type = #tpu.core_type<tc>, window_params = [{transform_indices = @transform_0, window_bounds = array<i64: 1, 8, 512>}, {pipeline_mode = #tpu.pipeline_mode<synchronous>, transform_indices = @transform_1, window_bounds = array<i64: 8, 200>}, {pipeline_mode = #tpu.pipeline_mode<synchronous>, transform_indices = @transform_2, window_bounds = array<i64: 8, 1>}, {pipeline_mode = #tpu.pipeline_mode<synchronous>, transform_indices = @transform_3, window_bounds = array<i64: 8, 200>}, {pipeline_mode = #tpu.pipeline_mode<synchronous>, transform_indices = @transform_4, window_bounds = array<i64: 8, 1>}, {transform_indices = @transform_5, window_bounds = array<i64: 1, 8, 384>}]} {
    %c0 = arith.constant 0 : index
    %c0_0 = arith.constant 0 : index
    %0 = vector.load %arg2[%c0, %c0_0] : memref<8x200xbf16, #tpu.memory_space<vmem>>, vector<8x200xbf16>
    %c0_1 = arith.constant 0 : index
    %c0_2 = arith.constant 0 : index
    %1 = vector.load %arg4[%c0_1, %c0_2] : memref<8x200xbf16, #tpu.memory_space<vmem>>, vector<8x200xbf16>
    %c0_3 = arith.constant 0 : index
    %c0_4 = arith.constant 0 : index
    %2 = vector.load %arg3[%c0_3, %c0_4] : memref<8x1xf32, #tpu.memory_space<vmem>>, vector<8x1xf32>
    %c0_5 = arith.constant 0 : index
    %c0_6 = arith.constant 0 : index
    %3 = vector.load %arg5[%c0_5, %c0_6] : memref<8x1xf32, #tpu.memory_space<vmem>>, vector<8x1xf32>
    %4 = tpu.iota {dimensions = array<i32: 1>} : vector<8x384xi32>
    %c24_i32 = arith.constant 24 : i32
    %c0_i32 = arith.constant 0 : i32
    %5 = arith.cmpi eq, %c24_i32, %c0_i32 : i32
    %c1_i32 = arith.constant 1 : i32
    %6 = arith.select %5, %c1_i32, %c24_i32 : i32
    %7 = vector.broadcast %6 : i32 to vector<8x384xi32>
    %8 = arith.remsi %4, %7 : vector<8x384xi32>
    %c0_i32_7 = arith.constant 0 : i32
    %9 = vector.broadcast %c0_i32_7 : i32 to vector<8x384xi32>
    %10 = arith.cmpi ne, %8, %9 : vector<8x384xi32>
    %c0_i32_8 = arith.constant 0 : i32
    %11 = vector.broadcast %c0_i32_8 : i32 to vector<8x384xi32>
    %12 = arith.cmpi slt, %8, %11 : vector<8x384xi32>
    %c0_i32_9 = arith.constant 0 : i32
    %13 = arith.cmpi slt, %6, %c0_i32_9 : i32
    %14 = vector.broadcast %13 : i1 to vector<8x384xi1>
    %15 = vector.broadcast %14 : vector<8x384xi1> to vector<8x384xi1>
    %16 = arith.xori %12, %15 : vector<8x384xi1>
    %17 = arith.andi %16, %10 : vector<8x384xi1>
    %18 = vector.broadcast %6 : i32 to vector<8x384xi32>
    %19 = arith.addi %8, %18 : vector<8x384xi32>
    %20 = arith.select %17, %19, %8 : vector<8x384xi1>, vector<8x384xi32>
    %c0_i32_10 = arith.constant 0 : i32
    %21 = vector.broadcast %c0_i32_10 : i32 to vector<8x384xi32>
    %22 = arith.cmpi eq, %20, %21 : vector<8x384xi32>
    %c1_i32_11 = arith.constant 1 : i32
    %23 = vector.broadcast %c1_i32_11 : i32 to vector<8x384xi32>
    %24 = arith.cmpi eq, %20, %23 : vector<8x384xi32>
    %c18_i32 = arith.constant 18 : i32
    %25 = vector.broadcast %c18_i32 : i32 to vector<8x384xi32>
    %26 = arith.cmpi eq, %20, %25 : vector<8x384xi32>
    %c19_i32 = arith.constant 19 : i32
    %27 = vector.broadcast %c19_i32 : i32 to vector<8x384xi32>
    %28 = arith.cmpi eq, %20, %27 : vector<8x384xi32>
    %cst = arith.constant 0.000000e+00 : f32
    %29 = vector.broadcast %cst : f32 to vector<8x32xf32>
    %c0_12 = arith.constant 0 : index
    %c480 = arith.constant 480 : index
    %30 = vector.load %arg7[%c0_12, %c480] : memref<8x512xf32, #tpu.memory_space<vmem>>, vector<8x32xf32>
    tpu.vector_store %arg7[%c0_12, %c480], %29 {strides = array<i32>} : memref<8x512xf32, #tpu.memory_space<vmem>>, vector<8x32xf32>,
    %c0_13 = arith.constant 0 : index
    %c0_14 = arith.constant 0 : index
    %c0_15 = arith.constant 0 : index
    %31 = vector.load %arg1[%c0_13, %c0_14, %c0_15] : memref<1x8x512xf32, #tpu.memory_space<vmem>>, vector<1x8x512xf32>
    %32 = vector.shape_cast %31 : vector<1x8x512xf32> to vector<8x512xf32>
    %33 = vector.extract_strided_slice %32 {offsets = [0, 0], sizes = [8, 384], strides = [1, 1]} : vector<8x512xf32> to vector<8x384xf32>
    %34 = vector.extract_strided_slice %32 {offsets = [0, 1], sizes = [8, 384], strides = [1, 1]} : vector<8x512xf32> to vector<8x384xf32>
    %35 = vector.extract_strided_slice %32 {offsets = [0, 2], sizes = [8, 384], strides = [1, 1]} : vector<8x512xf32> to vector<8x384xf32>
    %36 = vector.extract_strided_slice %32 {offsets = [0, 3], sizes = [8, 384], strides = [1, 1]} : vector<8x512xf32> to vector<8x384xf32>
    %37 = vector.extract_strided_slice %32 {offsets = [0, 4], sizes = [8, 384], strides = [1, 1]} : vector<8x512xf32> to vector<8x384xf32>
    %38 = vector.extract_strided_slice %32 {offsets = [0, 24], sizes = [8, 384], strides = [1, 1]} : vector<8x512xf32> to vector<8x384xf32>
    %39 = vector.extract_strided_slice %32 {offsets = [0, 25], sizes = [8, 384], strides = [1, 1]} : vector<8x512xf32> to vector<8x384xf32>
    %40 = vector.extract_strided_slice %32 {offsets = [0, 26], sizes = [8, 384], strides = [1, 1]} : vector<8x512xf32> to vector<8x384xf32>
    %41 = vector.extract_strided_slice %32 {offsets = [0, 27], sizes = [8, 384], strides = [1, 1]} : vector<8x512xf32> to vector<8x384xf32>
    %42 = vector.extract_strided_slice %32 {offsets = [0, 28], sizes = [8, 384], strides = [1, 1]} : vector<8x512xf32> to vector<8x384xf32>
    %43 = vector.extract_strided_slice %32 {offsets = [0, 48], sizes = [8, 384], strides = [1, 1]} : vector<8x512xf32> to vector<8x384xf32>
    %44 = vector.extract_strided_slice %32 {offsets = [0, 49], sizes = [8, 384], strides = [1, 1]} : vector<8x512xf32> to vector<8x384xf32>
    %45 = vector.extract_strided_slice %32 {offsets = [0, 50], sizes = [8, 384], strides = [1, 1]} : vector<8x512xf32> to vector<8x384xf32>
    %46 = vector.extract_strided_slice %32 {offsets = [0, 51], sizes = [8, 384], strides = [1, 1]} : vector<8x512xf32> to vector<8x384xf32>
    %47 = vector.extract_strided_slice %32 {offsets = [0, 52], sizes = [8, 384], strides = [1, 1]} : vector<8x512xf32> to vector<8x384xf32>
    %48 = vector.extract_strided_slice %32 {offsets = [0, 72], sizes = [8, 384], strides = [1, 1]} : vector<8x512xf32> to vector<8x384xf32>
    %49 = vector.extract_strided_slice %32 {offsets = [0, 73], sizes = [8, 384], strides = [1, 1]} : vector<8x512xf32> to vector<8x384xf32>
    %50 = vector.extract_strided_slice %32 {offsets = [0, 74], sizes = [8, 384], strides = [1, 1]} : vector<8x512xf32> to vector<8x384xf32>
    %51 = vector.extract_strided_slice %32 {offsets = [0, 75], sizes = [8, 384], strides = [1, 1]} : vector<8x512xf32> to vector<8x384xf32>
    %52 = vector.extract_strided_slice %32 {offsets = [0, 76], sizes = [8, 384], strides = [1, 1]} : vector<8x512xf32> to vector<8x384xf32>
    %53 = vector.extract_strided_slice %32 {offsets = [0, 96], sizes = [8, 384], strides = [1, 1]} : vector<8x512xf32> to vector<8x384xf32>
    %54 = vector.extract_strided_slice %32 {offsets = [0, 97], sizes = [8, 384], strides = [1, 1]} : vector<8x512xf32> to vector<8x384xf32>
    %55 = vector.extract_strided_slice %32 {offsets = [0, 98], sizes = [8, 384], strides = [1, 1]} : vector<8x512xf32> to vector<8x384xf32>
    %56 = vector.extract_strided_slice %32 {offsets = [0, 99], sizes = [8, 384], strides = [1, 1]} : vector<8x512xf32> to vector<8x384xf32>
    %57 = vector.extract_strided_slice %32 {offsets = [0, 100], sizes = [8, 384], strides = [1, 1]} : vector<8x512xf32> to vector<8x384xf32>
    %58 = tpu.concatenate %33, %34, %35, %36, %37, %38, %39, %40, %41, %42, %43, %44, %45, %46, %47, %48 in 0 : vector<8x384xf32>, vector<8x384xf32>, vector<8x384xf32>, vector<8x384xf32>, vector<8x384xf32>, vector<8x384xf32>, vector<8x384xf32>, vector<8x384xf32>, vector<8x384xf32>, vector<8x384xf32>, vector<8x384xf32>, vector<8x384xf32>, vector<8x384xf32>, vector<8x384xf32>, vector<8x384xf32>, vector<8x384xf32> -> vector<128x384xf32>
    %59 = tpu.concatenate %49, %50, %51, %52, %53, %54, %55, %56, %57 in 0 : vector<8x384xf32>, vector<8x384xf32>, vector<8x384xf32>, vector<8x384xf32>, vector<8x384xf32>, vector<8x384xf32>, vector<8x384xf32>, vector<8x384xf32>, vector<8x384xf32> -> vector<72x384xf32>
    %60 = tpu.concatenate %58, %59 in 0 : vector<128x384xf32>, vector<72x384xf32> -> vector<200x384xf32>
    %61 = arith.truncf %60 : vector<200x384xf32> to vector<200x384xbf16>
    %cst_16 = arith.constant dense<0.000000e+00> : vector<8x384xf32>
    %62 = tpu.matmul %0, %61, %cst_16 {dimension_numbers = #tpu.dot_dimension_numbers<[1], [0], [0], [1], [0, 0, 1, 1], [], []>} : vector<8x200xbf16>, vector<200x384xbf16>, vector<8x384xf32> -> vector<8x384xf32>
    %63 = vector.broadcast %2 : vector<8x1xf32> to vector<8x384xf32>
    %64 = arith.addf %62, %63 : vector<8x384xf32>
    %cst_17 = arith.constant 0.000000e+00 : f32
    %65 = vector.broadcast %cst_17 : f32 to vector<8x384xf32>
    %66 = arith.maximumf %64, %65 : vector<8x384xf32>
    %c2_i32 = arith.constant 2 : i32
    %67 = tpu.dynamic_rotate %66 by %c2_i32 dim 1 : vector<8x384xf32>, i32 -> vector<8x384xf32>
    %c382_i32 = arith.constant 382 : i32
    %68 = tpu.dynamic_rotate %66 by %c382_i32 dim 1 : vector<8x384xf32>, i32 -> vector<8x384xf32>
    %69 = arith.select %22, %68, %67 : vector<8x384xi1>, vector<8x384xf32>
    %c4_i32 = arith.constant 4 : i32
    %70 = tpu.dynamic_rotate %66 by %c4_i32 dim 1 : vector<8x384xf32>, i32 -> vector<8x384xf32>
    %71 = arith.select %26, %70, %69 : vector<8x384xi1>, vector<8x384xf32>
    %72 = arith.select %24, %66, %71 : vector<8x384xi1>, vector<8x384xf32>
    %c6_i32 = arith.constant 6 : i32
    %73 = tpu.dynamic_rotate %66 by %c6_i32 dim 1 : vector<8x384xf32>, i32 -> vector<8x384xf32>
    %74 = arith.select %28, %73, %72 : vector<8x384xi1>, vector<8x384xf32>
    %c0_18 = arith.constant 0 : index
    %c48 = arith.constant 48 : index
    %75 = vector.load %arg7[%c0_18, %c48] : memref<8x512xf32, #tpu.memory_space<vmem>>, vector<8x384xf32>
    tpu.vector_store %arg7[%c0_18, %c48], %74 {strides = array<i32>} : memref<8x512xf32, #tpu.memory_space<vmem>>, vector<8x384xf32>,
    %76 = vector.extract_strided_slice %74 {offsets = [0, 48], sizes = [8, 24], strides = [1, 1]} : vector<8x384xf32> to vector<8x24xf32>
    %c0_19 = arith.constant 0 : index
    %c0_20 = arith.constant 0 : index
    %77 = vector.load %arg7[%c0_19, %c0_20] : memref<8x512xf32, #tpu.memory_space<vmem>>, vector<8x24xf32>
    tpu.vector_store %arg7[%c0_19, %c0_20], %76 {strides = array<i32>} : memref<8x512xf32, #tpu.memory_space<vmem>>, vector<8x24xf32>,
    %78 = vector.extract_strided_slice %74 {offsets = [0, 24], sizes = [8, 24], strides = [1, 1]} : vector<8x384xf32> to vector<8x24xf32>
    %c0_21 = arith.constant 0 : index
    %c24 = arith.constant 24 : index
    %79 = vector.load %arg7[%c0_21, %c24] : memref<8x512xf32, #tpu.memory_space<vmem>>, vector<8x24xf32>
    tpu.vector_store %arg7[%c0_21, %c24], %78 {strides = array<i32>} : memref<8x512xf32, #tpu.memory_space<vmem>>, vector<8x24xf32>,
    %80 = vector.extract_strided_slice %74 {offsets = [0, 336], sizes = [8, 24], strides = [1, 1]} : vector<8x384xf32> to vector<8x24xf32>
    %c0_22 = arith.constant 0 : index
    %c432 = arith.constant 432 : index
    %81 = vector.load %arg7[%c0_22, %c432] : memref<8x512xf32, #tpu.memory_space<vmem>>, vector<8x24xf32>
    tpu.vector_store %arg7[%c0_22, %c432], %80 {strides = array<i32>} : memref<8x512xf32, #tpu.memory_space<vmem>>, vector<8x24xf32>,
    %82 = vector.extract_strided_slice %74 {offsets = [0, 312], sizes = [8, 24], strides = [1, 1]} : vector<8x384xf32> to vector<8x24xf32>
    %c0_23 = arith.constant 0 : index
    %c456 = arith.constant 456 : index
    %83 = vector.load %arg7[%c0_23, %c456] : memref<8x512xf32, #tpu.memory_space<vmem>>, vector<8x24xf32>
    tpu.vector_store %arg7[%c0_23, %c456], %82 {strides = array<i32>} : memref<8x512xf32, #tpu.memory_space<vmem>>, vector<8x24xf32>,
    %c0_24 = arith.constant 0 : index
    %c0_25 = arith.constant 0 : index
    %84 = vector.load %arg7[%c0_24, %c0_25] : memref<8x512xf32, #tpu.memory_space<vmem>>, vector<8x512xf32>
    %85 = vector.extract_strided_slice %84 {offsets = [0, 0], sizes = [8, 384], strides = [1, 1]} : vector<8x512xf32> to vector<8x384xf32>
    %86 = vector.extract_strided_slice %84 {offsets = [0, 1], sizes = [8, 384], strides = [1, 1]} : vector<8x512xf32> to vector<8x384xf32>
    %87 = vector.extract_strided_slice %84 {offsets = [0, 2], sizes = [8, 384], strides = [1, 1]} : vector<8x512xf32> to vector<8x384xf32>
    %88 = vector.extract_strided_slice %84 {offsets = [0, 3], sizes = [8, 384], strides = [1, 1]} : vector<8x512xf32> to vector<8x384xf32>
    %89 = vector.extract_strided_slice %84 {offsets = [0, 4], sizes = [8, 384], strides = [1, 1]} : vector<8x512xf32> to vector<8x384xf32>
    %90 = vector.extract_strided_slice %84 {offsets = [0, 24], sizes = [8, 384], strides = [1, 1]} : vector<8x512xf32> to vector<8x384xf32>
    %91 = vector.extract_strided_slice %84 {offsets = [0, 25], sizes = [8, 384], strides = [1, 1]} : vector<8x512xf32> to vector<8x384xf32>
    %92 = vector.extract_strided_slice %84 {offsets = [0, 26], sizes = [8, 384], strides = [1, 1]} : vector<8x512xf32> to vector<8x384xf32>
    %93 = vector.extract_strided_slice %84 {offsets = [0, 27], sizes = [8, 384], strides = [1, 1]} : vector<8x512xf32> to vector<8x384xf32>
    %94 = vector.extract_strided_slice %84 {offsets = [0, 28], sizes = [8, 384], strides = [1, 1]} : vector<8x512xf32> to vector<8x384xf32>
    %95 = vector.extract_strided_slice %84 {offsets = [0, 48], sizes = [8, 384], strides = [1, 1]} : vector<8x512xf32> to vector<8x384xf32>
    %96 = vector.extract_strided_slice %84 {offsets = [0, 49], sizes = [8, 384], strides = [1, 1]} : vector<8x512xf32> to vector<8x384xf32>
    %97 = vector.extract_strided_slice %84 {offsets = [0, 50], sizes = [8, 384], strides = [1, 1]} : vector<8x512xf32> to vector<8x384xf32>
    %98 = vector.extract_strided_slice %84 {offsets = [0, 51], sizes = [8, 384], strides = [1, 1]} : vector<8x512xf32> to vector<8x384xf32>
    %99 = vector.extract_strided_slice %84 {offsets = [0, 52], sizes = [8, 384], strides = [1, 1]} : vector<8x512xf32> to vector<8x384xf32>
    %100 = vector.extract_strided_slice %84 {offsets = [0, 72], sizes = [8, 384], strides = [1, 1]} : vector<8x512xf32> to vector<8x384xf32>
    %101 = vector.extract_strided_slice %84 {offsets = [0, 73], sizes = [8, 384], strides = [1, 1]} : vector<8x512xf32> to vector<8x384xf32>
    %102 = vector.extract_strided_slice %84 {offsets = [0, 74], sizes = [8, 384], strides = [1, 1]} : vector<8x512xf32> to vector<8x384xf32>
    %103 = vector.extract_strided_slice %84 {offsets = [0, 75], sizes = [8, 384], strides = [1, 1]} : vector<8x512xf32> to vector<8x384xf32>
    %104 = vector.extract_strided_slice %84 {offsets = [0, 76], sizes = [8, 384], strides = [1, 1]} : vector<8x512xf32> to vector<8x384xf32>
    %105 = vector.extract_strided_slice %84 {offsets = [0, 96], sizes = [8, 384], strides = [1, 1]} : vector<8x512xf32> to vector<8x384xf32>
    %106 = vector.extract_strided_slice %84 {offsets = [0, 97], sizes = [8, 384], strides = [1, 1]} : vector<8x512xf32> to vector<8x384xf32>
    %107 = vector.extract_strided_slice %84 {offsets = [0, 98], sizes = [8, 384], strides = [1, 1]} : vector<8x512xf32> to vector<8x384xf32>
    %108 = vector.extract_strided_slice %84 {offsets = [0, 99], sizes = [8, 384], strides = [1, 1]} : vector<8x512xf32> to vector<8x384xf32>
    %109 = vector.extract_strided_slice %84 {offsets = [0, 100], sizes = [8, 384], strides = [1, 1]} : vector<8x512xf32> to vector<8x384xf32>
    %110 = tpu.concatenate %85, %86, %87, %88, %89, %90, %91, %92, %93, %94, %95, %96, %97, %98, %99, %100 in 0 : vector<8x384xf32>, vector<8x384xf32>, vector<8x384xf32>, vector<8x384xf32>, vector<8x384xf32>, vector<8x384xf32>, vector<8x384xf32>, vector<8x384xf32>, vector<8x384xf32>, vector<8x384xf32>, vector<8x384xf32>, vector<8x384xf32>, vector<8x384xf32>, vector<8x384xf32>, vector<8x384xf32>, vector<8x384xf32> -> vector<128x384xf32>
    %111 = tpu.concatenate %101, %102, %103, %104, %105, %106, %107, %108, %109 in 0 : vector<8x384xf32>, vector<8x384xf32>, vector<8x384xf32>, vector<8x384xf32>, vector<8x384xf32>, vector<8x384xf32>, vector<8x384xf32>, vector<8x384xf32>, vector<8x384xf32> -> vector<72x384xf32>
    %112 = tpu.concatenate %110, %111 in 0 : vector<128x384xf32>, vector<72x384xf32> -> vector<200x384xf32>
    %113 = arith.truncf %112 : vector<200x384xf32> to vector<200x384xbf16>
    %cst_26 = arith.constant dense<0.000000e+00> : vector<8x384xf32>
    %114 = tpu.matmul %1, %113, %cst_26 {dimension_numbers = #tpu.dot_dimension_numbers<[1], [0], [0], [1], [0, 0, 1, 1], [], []>} : vector<8x200xbf16>, vector<200x384xbf16>, vector<8x384xf32> -> vector<8x384xf32>
    %115 = vector.broadcast %3 : vector<8x1xf32> to vector<8x384xf32>
    %116 = arith.addf %114, %115 : vector<8x384xf32>
    %cst_27 = arith.constant 0.000000e+00 : f32
    %117 = vector.broadcast %cst_27 : f32 to vector<8x384xf32>
    %118 = arith.maximumf %116, %117 : vector<8x384xf32>
    %c0_28 = arith.constant 0 : index
    %c0_29 = arith.constant 0 : index
    %c0_30 = arith.constant 0 : index
    %119 = vector.load %arg6[%c0_28, %c0_29, %c0_30] : memref<1x8x384xf32, #tpu.memory_space<vmem>>, vector<1x8x384xf32>
    %120 = vector.shape_cast %119 : vector<1x8x384xf32> to vector<8x384xf32>
    %121 = vector.shape_cast %118 : vector<8x384xf32> to vector<1x8x384xf32>
    tpu.vector_store %arg6[%c0_28, %c0_29, %c0_30], %121 {strides = array<i32>} : memref<1x8x384xf32, #tpu.memory_space<vmem>>, vector<1x8x384xf32>,
    return
  }
  func.func @transform_0(%arg0: i32) -> (i32, i32, i32) {
    %c0_i32 = arith.constant 0 : i32
    %c0_i32_0 = arith.constant 0 : i32
    %c0_i32_1 = arith.constant 0 : i32
    return %arg0, %c0_i32, %c0_i32_0 : i32, i32, i32
  }
  func.func @transform_1(%arg0: i32) -> (i32, i32) {
    %c0_i32 = arith.constant 0 : i32
    %c0_i32_0 = arith.constant 0 : i32
    %c0_i32_1 = arith.constant 0 : i32
    return %c0_i32, %c0_i32_0 : i32, i32
  }
  func.func @transform_2(%arg0: i32) -> (i32, i32) {
    %c0_i32 = arith.constant 0 : i32
    %c0_i32_0 = arith.constant 0 : i32
    %c0_i32_1 = arith.constant 0 : i32
    return %c0_i32, %c0_i32_0 : i32, i32
  }
  func.func @transform_3(%arg0: i32) -> (i32, i32) {
    %c0_i32 = arith.constant 0 : i32
    %c0_i32_0 = arith.constant 0 : i32
    %c0_i32_1 = arith.constant 0 : i32
    return %c0_i32, %c0_i32_0 : i32, i32
  }
  func.func @transform_4(%arg0: i32) -> (i32, i32) {
    %c0_i32 = arith.constant 0 : i32
    %c0_i32_0 = arith.constant 0 : i32
    %c0_i32_1 = arith.constant 0 : i32
    return %c0_i32, %c0_i32_0 : i32, i32
  }
  func.func @transform_5(%arg0: i32) -> (i32, i32, i32) {
    %c0_i32 = arith.constant 0 : i32
    %c0_i32_0 = arith.constant 0 : i32
    %c0_i32_1 = arith.constant 0 : i32
    return %arg0, %c0_i32, %c0_i32_0 : i32, i32, i32
  }
}

</mosaic_0001>

<bundles_post_ra>
// kernel: tpu_custom_call.1
= control target key start
LH: loop header
LB: loop body
LE: loop exit
PB: predicated region body
PF: predicated region fallthrough
CT: control target
= control target key end

     0   :  { %10 = vsyncpa [#allocation4], 0  ;;  %s3590_s0 = inlined_call_operand.hbm [shape: f32[2,8,512], index: 0, kind: input, shape index: {}]   ;;  %s3591_s1 = inlined_call_operand.vmem [shape: bf16[8,200], index: 1, kind: input, shape index: {}]   ;;  %s3592_s2 = inlined_call_operand.vmem [shape: f32[8,1], index: 2, kind: input, shape index: {}]   ;;  %s3593_s3 = inlined_call_operand.vmem [shape: bf16[8,200], index: 3, kind: input, shape index: {}]   ;;  %s3594_s4 = inlined_call_operand.vmem [shape: f32[8,1], index: 4, kind: input, shape index: {}]   ;;  %s3595_s5 = inlined_call_operand.hbm [shape: f32[2,8,384], index: 5, kind: output, shape index: {}]  }
   0x1   :  { %12 = vsyncpa [#allocation4 + $0x1], 0 }
   0x2   :  { %13 = vsyncpa [#allocation5], 0 }
   0x3   :  { %15 = vsyncpa [#allocation5 + $0x1], 0  ;;  %s2309_s18 = smov 0   ;;  %s2311_s19 = smov 0  }
   0x4   :  { %s2313_s20 = smov 0   ;;  %s2315_s21 = smov 0  }
   0x5 LB: > { %s2330_s22 = sadd.s32 4294967295, %s2252_s21   ;;  %s1563_s23 = sadd.s32 4294967294, %s2252_s21   ;;  %s2252_s21 = sphi %s2315_s21, %s3747_s21   ;;  %s2248_s20 = sphi %s2313_s20, %s3746_s20   ;;  %s2244_s19 = sphi %s2311_s19, %s3745_s19   ;;  %s2240_s18 = sphi %s2309_s18, %s3744_s18  }
   0x6   : > { %s2334_s24 = sadd.s32 1, %s2252_s21   ;;  %s28_s25 = sadd.s32 1, %s2248_s20 }
   0x7   : > { %s25_s26 = ssub.s32 %s2252_s21, %s2334_s24  ;;  %p35_p0 = scmp.ne.s32.totalorder %s2248_s20, %s2244_s19 }
   0x8   : > { %p26_p1 = scmp.eq.s32.totalorder %s25_s26, 0  ;;  %p36_p2 = scmp.eq.s32.totalorder %s2252_s21, 0 }
   0x9   : > { %p41_p3 = scmp.ne.s32.totalorder %s2244_s19, %s2240_s18  ;;  %p42_p4 = scmp.eq.s32.totalorder %s2330_s22, 0 }
   0xa   : > { %s2346_s27 = scalar_select %p26_p1, %s2248_s20, %s28_s25  }
   0xb   : > { %p2348_p5 = por %p36_p2, %p35_p0  ;;  %p2352_p6 = por %p42_p4, %p41_p3 }
   0xc   : > { %p149_p7 = scmp.eq.s32.totalorder %s2330_s22, 1  ;;  %p155_p8 = scmp.eq.s32.totalorder %s1563_s23, 1 }
   0xd   : > { %p1595_p10 = scmp.lt.s32.totalorder %s2252_s21, 2  ;;  %s187_s7 = sand.u32 1, %s2248_s20  }
   0xe   : > { %p2359_p11 = por %p149_p7, %p35_p0  ;;  %p2363_p12 = por %p155_p8, %p41_p3 }
   0xf   : > { %s1580_s8 = sshll.u32 %s2252_s21, 5  ;;  %s1566_s9 = sshll.u32 %s187_s7, 5 }
  0x10   : > { %s196_s12 = scalar_lea.hbm %s3590_s0, %s1580_s8  ;;  %s191_s14 = scalar_lea.vmem [#allocation3], %s1566_s9 }
  0x11   : > { %s198_s13 = sshll.u32 %s196_s12, 4  ;;  %s200_s15 = sshll.u32 %s191_s14, 4  ;;  %s199_s13 = int_to_ptr.hbm [resolvable:$true] %s198_s13  ;;  %s201_s15 = int_to_ptr.vmem [resolvable:$true] %s200_s15 }
  0x12   : > { %p2374_p13 = pnand %p1595_p10, %p2348_p5  ;;  %p1569_p0 = scmp.ge.s32.totalorder %s2252_s21, 1 }
  0x13   : > { %p205_p1 = scmp.lt.s32.totalorder %s2252_s21, 3  ;;  %s188_s17 = scalar_lea.sflag [#allocation4], %s187_s7 }
  0x14   : > { %s2156_s23 = sshra.s32 %s199_s13, 4  ;;  %p2160_p3 = pneg %p2374_p13  ;;  %s2157_s23 = int_to_ptr.hbm [resolvable:$true] %s2156_s23 }
  0x15   : > { %s2158_s25 = scalar_lea.hbm %s2157_s23, 32  ;;  %s2163_s28 = scalar_lea.hbm %s3590_s0, 64 }
  0x16   : > { %p2159_p2 = scmp.ne.s32.totalorder %s2157_s23, %s2158_s25  ;;  %p2164_p5 = scmp.lt.s32.totalorder %s2157_s23, %s3590_s0 }
  0x17   : > { %p2165_p8 = scmp.lt.s32.totalorder %s2163_s28, %s2158_s25 }
  0x18   : > { %p2161_p4 = pnand %p2160_p3, %p2159_p2 }
  0x19   : > { %p2166_p10 = por %p2165_p8, %p2164_p5 }
  0x1a   : > { %p2162_p7 = pneg %p2161_p4 }
  0x1c   : > { %p2167_p9 = pnand %p2166_p10, %p2162_p7 }
  0x1e   : > { %2170 = shalt.err (!%p2167_p9)
}
  0x1f   : > { %1590 = dma.hbm_to_vmem [thread:$0]  (!%p2374_p13), %s199_s13, 512, %s201_s15, %s188_s17  }
  0x20   : > { %p206_p2 = pnand %p1569_p0, %p205_p1 }
  0x21   : > { %s2395_s7 = sand.u32 (!%p206_p2), 1, %s2244_s19  }
  0x22   : > { %209 = sbr.rel (%p206_p2) target bundleno = 1256 (0x4e8), region = 40  ;;  %s1570_s11 = sshll.u32 (!%p206_p2), %s2395_s7, 5 }
  0x23   : > { %s212_s12 = scalar_lea.sflag (!%p206_p2), [#allocation4], %s2395_s7  ;;  %s215_s14 = scalar_lea.vmem (!%p206_p2), [#allocation3], %s1570_s11 }
  0x27   : > { %2231 = dma.done.wait (%p2352_p6), %s212_s12, 512  }
  0x28   : > { %2233 = vsyncadd (%p2352_p6), %s212_s12, 4294966784  ;;  %v2403_v0 = vld [vmem:[%s215_s14] sm:$0xff]  ;;  %v2405_v1 = vld [vmem:[%s215_s14 + $0x8] sm:$0xff]  ;;  %s2254_s13 = smov 125   ;;  %s2255_s15 = smov 126   ;;  %vm414_vm0 = vcmask 1022976  }
  0x29   : > { %v1674_v2 = vpack.i.bf16 %v2405_v1, %v2403_v0  ;;  %s2256_s16 = smov 127   ;;  %v2412_v3 = vld [vmem:[%s215_s14 + $0x10] sm:$0xff]  ;;  %v2414_v4 = vld [vmem:[%s215_s14 + $0x18] sm:$0xff]  ;;  %s2257_s29 = smov 104   ;;  %vm399_vm1 = vcmask 1031168   ;;  %vm3627_vm2 = vcmask 850944  }
  0x2a   : > { %v1679_v5 = vpack.i.bf16 %v2414_v4, %v2412_v3  ;;  %s2258_s17 = smov 124   ;;  %v1709_v6 = vpack.i.bf16 %v2412_v3, %v2405_v1  ;;  %s2259_s23 = smov 101   ;;  %v1714_v7 = vpack.i.bf16 %v2403_v0, %v2414_v4  ;;  %v2442_v8 = vpack.i.bf16 %v2414_v4, %v2403_v0 }
  0x2b   : > { %1675 = vrot.lane.b32.xlu2 %v1674_v2, %s2254_s13  ;;  %1665 = vrot.lane.b32.xlu1 %v1674_v2, %s2255_s15  ;;  %s2260_s25 = smov 103   ;;  %s2261_s26 = smov 102   ;;  %vm3633_vm3 = vcmask 1014784   ;;  %vm3631_vm4 = vcmask 834560   ;;  %vm3632_vm5 = vcmask 826368   ;;  %vm3630_vm6 = vcmask 842752  }
  0x2c   : > { %1655 = vrot.lane.b32.xlu0 %v1674_v2, %s2256_s16  ;;  %s3596_s8 = smov 105   ;;  %s2263_s28 = smov 56   ;;  %vm3629_vm7 = vcmask 859136   ;;  %vm3628_vm8 = vcmask 457728   ;;  %vm3625_vm9 = vcmask 621568   ;;  %vm3624_vm10 = vcmask 637952  }
  0x2d   : > { %s2264_s9 = smov 76   ;;  %s2265_s10 = smov 78   ;;  %vm3617_vm11 = vcmask 629760   ;;  %vm3612_vm12 = vcmask 646144   ;;  %vm3611_vm13 = vcmask 654336   ;;  %vm3626_vm14 = vcmask 1039360  }
  0x2e   : > { %s3618_s11 = smov 77   ;;  %s3598_s12 = smov 79   ;;  %vm3623_vm15 = vcmask 818176  }
  0x2f   : > { %s2268_s14 = smov 80  }
  0x33   : > { %1680 = vrot.lane.b32.xlu2 %v1679_v5, %s2254_s13  ;;  %1670 = vrot.lane.b32.xlu1 %v1679_v5, %s2255_s15 }
  0x34   : > { %1660 = vrot.lane.b32.xlu0 %v1679_v5, %s2256_s16 }
  0x3b   : > { %1695 = vrot.lane.b32.xlu2 %v1674_v2, %s2257_s29  ;;  %1690 = vrot.lane.b32.xlu1 %v1679_v5, %s2258_s17 }
  0x3c   : > { %1685 = vrot.lane.b32.xlu0 %v1674_v2, %s2258_s17 }
  0x43   : > { %1710 = vrot.lane.b32.xlu2 %v1709_v6, %s2259_s23  ;;  %1705 = vrot.lane.b32.xlu1 %v1674_v2, %s2260_s25 }
  0x44   : > { %1700 = vrot.lane.b32.xlu0 %v1679_v5, %s2257_s29 }
  0x4b   : > { %1725 = vrot.lane.b32.xlu2 %v1709_v6, %s2261_s26  ;;  %1720 = vrot.lane.b32.xlu1 %v1679_v5, %s2260_s25 }
  0x4c   : > { %1715 = vrot.lane.b32.xlu0 %v1714_v7, %s2259_s23 }
  0x53   : > { %1740 = vrot.lane.b32.xlu2 %v1714_v7, %s3596_s8  ;;  %1735 = vrot.lane.b32.xlu1 %v1709_v6, %s3596_s8  ;;  %s3615_s8 = smov 100  }
  0x54   : > { %1730 = vrot.lane.b32.xlu0 %v1714_v7, %s2261_s26 }
  0x5b   : > { %1750 = vrot.lane.b32.xlu2 %v1709_v6, %s2263_s28  ;;  %1745 = vrot.lane.b32.xlu1 %v1709_v6, %s2264_s9 }
  0x5c   : > { %1755 = vrot.lane.b32.xlu0 %v1709_v6, %s2265_s10 }
  0x63   : > { %1765 = vrot.lane.b32.xlu2 %v2442_v8, %s2264_s9  ;;  %1760 = vrot.lane.b32.xlu1 %v1709_v6, %s3618_s11 }
  0x64   : > { %1770 = vrot.lane.b32.xlu0 %v2442_v8, %s2263_s28 }
  0x6b   : > { %1780 = vrot.lane.b32.xlu2 %v1709_v6, %s3598_s12  ;;  %1775 = vrot.lane.b32.xlu1 %v1709_v6, %s2268_s14 }
  0x6c   : > { %1785 = vrot.lane.b32.xlu0 %v2442_v8, %s2265_s10 }
  0x73   : > { %1795 = vrot.lane.b32.xlu2 %v1709_v6, %s3615_s8  ;;  %1790 = vrot.lane.b32.xlu1 %v2442_v8, %s3618_s11  ;;  %s2274_s11 = smov 6  }
  0x74   : > { %1800 = vrot.lane.b32.xlu0 %v2442_v8, %s2268_s14 }
  0x7b   : > { %1805 = vrot.lane.b32.xlu1 %v2442_v8, %s3598_s12  ;;  %s3613_s12 = smov 55  }
  0x7c   : > { %1810 = vrot.lane.b32.xlu2 %v1709_v6, %s3613_s12 }
  0x85   : > { %v2456_v9 = vpop.permute.xlu2 %1675 }
  0x86   : > { %v1678_v12 = vunpack.i.h.bf16 %v2456_v9  ;;  %v1677_v13 = vunpack.i.l.bf16 %v2456_v9 }
  0x88   : > { %v2479_v19 = vsel %vm414_vm0, %v1677_v13, %v1678_v12 }
  0x8d   : > { %v2458_v10 = vpop.permute.xlu2 %1680 }
  0x8e   : > { %v3602_v22 = vunpack.i.h.bf16 %v2458_v10  ;;  %v1682_v24 = vunpack.i.l.bf16 %v2458_v10 }
  0x90   : > { %v2502_v28 = vsel %vm414_vm0, %v1682_v24, %v3602_v22 }
  0x95   : > { %v2460_v11 = vpop.permute.xlu2 %1695 }
  0x96   : > { %v1698_v31 = vunpack.i.h.bf16 %v2460_v11  ;;  %v1697_v32 = vunpack.i.l.bf16 %v2460_v11 }
  0x98   : > { %v2526_v40 = vsel %vm3627_vm2, %v1697_v32, %v1698_v31 }
  0x9d   : > { %v2468_v14 = vpop.permute.xlu1 %1665  ;;  %v2474_v18 = vpop.permute.xlu2 %1710 }
  0x9e   : > { %v1668_v15 = vunpack.i.h.bf16 %v2468_v14  ;;  %v1667_v16 = vunpack.i.l.bf16 %v2468_v14  ;;  %v2472_v17 = vpop.permute.xlu0 %1655  ;;  %v1713_v53 = vunpack.i.h.bf16 %v2474_v18  ;;  %v1712_v54 = vunpack.i.l.bf16 %v2474_v18 }
  0xa0   : > { %v2484_v20 = vsel %vm399_vm1, %v1667_v16, %v1668_v15  ;;  %v2567_v62 = vsel %vm3632_vm5, %v1712_v54, %v1713_v53 }
  0xa5   : > { %v2490_v23 = vpop.permute.xlu1 %1670  ;;  %v2504_v29 = vpop.permute.xlu2 %1725 }
  0xa6   : > { %v3609_v25 = vunpack.i.h.bf16 %v2490_v23  ;;  %v1672_v26 = vunpack.i.l.bf16 %v2490_v23  ;;  %v2495_v27 = vpop.permute.xlu0 %1660  ;;  %v1728_v50 = vunpack.i.h.bf16 %v2504_v29  ;;  %v1727_v51 = vunpack.i.l.bf16 %v2504_v29 }
  0xa8   : > { %v2511_v30 = vsel %vm399_vm1, %v1672_v26, %v3609_v25  ;;  %v2564_v60 = vsel %vm3631_vm4, %v1727_v51, %v1728_v50 }
  0xad   : > { %v2517_v34 = vpop.permute.xlu1 %1690  ;;  %v2540_v44 = vpop.permute.xlu2 %1740 }
  0xae   : > { %v1693_v35 = vunpack.i.h.bf16 %v2517_v34  ;;  %v1692_v36 = vunpack.i.l.bf16 %v2517_v34  ;;  %v2521_v37 = vpop.permute.xlu0 %1685  ;;  %v1742_v18 = vunpack.i.l.bf16 %v2540_v44  ;;  %v1743_v22 = vunpack.i.h.bf16 %v2540_v44 }
  0xaf   : > { %v1688_v38 = vunpack.i.h.bf16 %v2521_v37  ;;  %v1687_v39 = vunpack.i.l.bf16 %v2521_v37 }
  0xb0   : > { %v2531_v41 = vsel %vm3633_vm3, %v1692_v36, %v1693_v35 }
  0xb1   : > { %v2536_v42 = vsel %vm3633_vm3, %v1687_v39, %v1688_v38  ;;  %v431_v44 = vsel %vm3633_vm3, %v1688_v38, %v1692_v36 }
  0xb5   : > { %v1706_v45 = vpop.permute.xlu1 %1705  ;;  %v2557_v55 = vpop.permute.xlu2 %1750 }
  0xb6   : > { %v2542_v46 = vpop.permute.xlu0 %1700  ;;  %v1708_v11 = vunpack.i.h.bf16 %v1706_v45  ;;  %v1707_v13 = vunpack.i.l.bf16 %v1706_v45  ;;  %v3600_v45 = vunpack.i.h.bf16 %v2557_v55 }
  0xb7   : > { %v1703_v47 = vunpack.i.h.bf16 %v2542_v46  ;;  %v1702_v48 = vunpack.i.l.bf16 %v2542_v46 }
  0xb9   : > { %v2549_v49 = vsel %vm3627_vm2, %v1702_v48, %v1703_v47 }
  0xbd   : > { %v2559_v56 = vpop.permute.xlu1 %1720  ;;  %v2586_v39 = vpop.permute.xlu2 %1765 }
  0xbe   : > { %v1723_v57 = vunpack.i.h.bf16 %v2559_v56  ;;  %v1722_v58 = vunpack.i.l.bf16 %v2559_v56  ;;  %v1716_v59 = vpop.permute.xlu0 %1715 }
  0xbf   : > { %v1717_v61 = vunpack.i.l.bf16 %v1716_v59  ;;  %v1718_v7 = vunpack.i.h.bf16 %v1716_v59 }
  0xc0   : > { %v2572_v63 = vsel %vm3630_vm6, %v1722_v58, %v1723_v57 }
  0xc1   : > { %v1824_v2 = vpack.i.bf16 %v2564_v60, %v2572_v63  ;;  %v2577_v5 = vsel %vm3632_vm5, %v1713_v53, %v1717_v61 }
  0xc2   : > { %v1814_v6 = vpack.i.bf16 %v2577_v5, %v2567_v62 }
  0xc3   : > { %1825 = vrot.lane.b32.xlu1 %v1824_v2, %s3613_s12  ;;  %v2591_v2 = vsel %vm3630_vm6, %v1708_v11, %v1722_v58 }
  0xc4   : > { %1815 = vrot.lane.b32.xlu0 %v1814_v6, %s3613_s12  ;;  %v2594_v6 = vsel %vm3632_vm5, %v1718_v7, %v1712_v54  ;;  %v2614_v7 = vsel %vm3630_vm6, %v1707_v13, %v1708_v11 }
  0xc5   : > { %v1736_v16 = vpop.permute.xlu1 %1735 }
  0xc6   : > { %v1738_v29 = vunpack.i.h.bf16 %v1736_v16  ;;  %v1737_v32 = vunpack.i.l.bf16 %v1736_v16  ;;  %v2584_v35 = vpop.permute.xlu0 %1730  ;;  %v2599_v16 = vsel %vm3627_vm2, %v1698_v31, %v1702_v48  ;;  %v3610_v31 = vunpack.i.l.bf16 %v2557_v55 }
  0xc7   : > { %v1733_v53 = vunpack.i.h.bf16 %v2584_v35  ;;  %v1732_v59 = vunpack.i.l.bf16 %v2584_v35  ;;  %v747_v46 = vpack.c.bf16 %v2599_v16, %v431_v44 }
  0xc8   : > { %v611_v33 = vsel %vm3629_vm7, %v1737_v32, %v1738_v29  ;;  %v612_v52 = vsel %vm3629_vm7, %v1738_v29, %v1742_v18  ;;  %v1819_v29 = vpack.i.bf16 %v2591_v2, %v2594_v6  ;;  %v596_v11 = vsel %vm3628_vm8, %v3610_v31, %v3600_v45 }
  0xc9   : > { %v2607_v21 = vsel %vm3631_vm4, %v1728_v50, %v1732_v59  ;;  %v1834_v58 = vpack.i.bf16 %v2599_v16, %v612_v52  ;;  %v2611_v54 = vsel %vm3631_vm4, %v1733_v53, %v1727_v51  ;;  %v1839_v45 = vpack.i.bf16 %v2614_v7, %v2549_v49 }
  0xca   : > { %v1829_v48 = vpack.i.bf16 %v611_v33, %v2607_v21  ;;  %v1657_v31 = vunpack.i.l.bf16 %v2472_v17 }
  0xcb   : > { %1835 = vrot.lane.b32.xlu1 %v1834_v58, %s3613_s12  ;;  %v1864_v58 = vpack.i.bf16 %v1717_v61, %v2526_v40 }
  0xcc   : > { %1830 = vrot.lane.b32.xlu2 %v1829_v48, %s3613_s12  ;;  %1820 = vrot.lane.b32.xlu0 %v1819_v29, %s3613_s12  ;;  %v2644_v48 = vpop.permute.xlu2 %1780  ;;  %v2651_v29 = vsel %vm399_vm1, %v1668_v15, %v1672_v26 }
  0xcd   : > { %v2627_v51 = vpop.permute.xlu1 %1745  ;;  %v1844_v43 = vpack.i.bf16 %v2651_v29, %v2611_v54 }
  0xce   : > { %v3601_v33 = vunpack.i.h.bf16 %v2627_v51  ;;  %v1747_v52 = vunpack.i.l.bf16 %v2627_v51  ;;  %v2636_v13 = vpop.permute.xlu0 %1755 }
  0xcf   : > { %v3604_v61 = vunpack.i.l.bf16 %v2636_v13 }
  0xd0   : > { %v581_v53 = vsel %vm3625_vm9, %v1747_v52, %v3601_v33  ;;  %v3603_v33 = vunpack.i.h.bf16 %v2636_v13 }
  0xd1   : > { %v762_v50 = vpack.c.bf16 %v596_v11, %v581_v53  ;;  %v3606_v53 = vunpack.i.h.bf16 %v2644_v48 }
  0xd2   : > { %v551_v11 = vsel %vm3624_vm10, %v3604_v61, %v3603_v33  ;;  %v1874_v33 = vpack.i.bf16 %v2479_v19, %v2484_v20 }
  0xd3   : > { %1865 = vrot.lane.b32.xlu1 %v1864_v58, %s3613_s12  ;;  %830 = vmatpush.bf16.msra.mxu2 %v762_v50  ;;  %v610_v50 = vsel %vm3629_vm7, %v1743_v22, %v1737_v32  ;;  %v3607_v58 = vunpack.i.l.bf16 %v2644_v48 }
  0xd4   : > { %1845 = vrot.lane.b32.xlu0 %v1844_v43, %s3613_s12  ;;  %1840 = vrot.lane.b32.xlu2 %v1839_v45, %s3613_s12  ;;  %v416_v43 = vsel %vm414_vm0, %v1678_v12, %v1682_v24  ;;  %v1859_v32 = vpack.i.bf16 %v610_v50, %v2502_v28  ;;  %v1663_v12 = vunpack.i.h.bf16 %v2495_v27  ;;  %v1662_v24 = vunpack.i.l.bf16 %v2495_v27  ;;  %v2691_v61 = vpop.permute.xlu2 %1795 }
  0xd5   : > { %v2663_v14 = vpop.permute.xlu1 %1760  ;;  %v1849_v9 = vpack.i.bf16 %v416_v43, %v2511_v30  ;;  %v536_v27 = vsel %vm3612_vm12, %v3607_v58, %v3606_v53  ;;  %v1798_v50 = vunpack.i.h.bf16 %v2691_v61  ;;  %v1879_v58 = vpack.i.bf16 %v1732_v59, %v1723_v57 }
  0xd6   : > { %v3605_v15 = vunpack.i.h.bf16 %v2663_v14  ;;  %v3608_v26 = vunpack.i.l.bf16 %v2663_v14  ;;  %v1767_v57 = vunpack.i.l.bf16 %v2586_v39  ;;  %v1899_v59 = vpack.i.bf16 %v1663_v12, %v2414_v4 }
  0xd8   : > { %v566_v45 = vsel %vm3617_vm11, %v3608_v26, %v3605_v15  ;;  %v2710_v15 = vsel %vm3626_vm14, %v1662_v24, %v1663_v12  ;;  %v580_v4 = vsel %vm3625_vm9, %v1767_v57, %v1747_v52  ;;  %v3642_v52 = vunpack.i.h.bf16 %v2458_v10 }
  0xd9   : > { %v759_v22 = vpack.c.bf16 %v566_v45, %v551_v11  ;;  %v1658_v11 = vunpack.i.h.bf16 %v2472_v17  ;;  %v750_v17 = vpack.c.bf16 %v2564_v60, %v2591_v2  ;;  %v744_v2 = vpack.c.bf16 %v416_v43, %v2651_v29 }
  0xdb   : > { %1875 = vrot.lane.b32.xlu1 %v1874_v33, %s3613_s12  ;;  %831 = vmatpush.bf16.msra.mxu2 %v759_v22  ;;  %v1797_v33 = vunpack.i.l.bf16 %v2691_v61  ;;  %v2735_v35 = vsel %vm3626_vm14, %v1657_v31, %v1658_v11  ;;  %v3641_v31 = vunpack.i.h.bf16 %v2490_v23  ;;  %v3644_v23 = vunpack.i.l.bf16 %v2663_v14 }
  0xdc   : > { %1860 = vrot.lane.b32.xlu0 %v1859_v32, %s3613_s12  ;;  %1850 = vrot.lane.b32.xlu2 %v1849_v9, %s3613_s12  ;;  %v386_v9 = vsel %vm3626_vm14, %v1658_v11, %v1662_v24  ;;  %v3643_v11 = vunpack.i.l.bf16 %v2636_v13  ;;  %v3655_v61 = vpack.c.bf16 %v2549_v49, %v2531_v41 }
  0xdd   : > { %v2697_v45 = vpop.permute.xlu1 %1775  ;;  %v1869_v25 = vpack.i.bf16 %v2710_v15, %v386_v9  ;;  %v506_v24 = vsel %vm3623_vm15, %v1797_v33, %v1798_v50  ;;  %v1894_v34 = vpack.i.bf16 %v3642_v52, %v3641_v31  ;;  %v741_v16 = vpack.c.bf16 %v386_v9, %v2405_v1 }
  0xde   : > { %v1778_v22 = vunpack.i.h.bf16 %v2697_v45  ;;  %v1777_v32 = vunpack.i.l.bf16 %v2697_v45  ;;  %v753_v56 = vpack.c.bf16 %v506_v24, %v2567_v62  ;;  %v1771_v62 = vpop.permute.xlu0 %1770  ;;  %v3646_v9 = vunpack.i.h.bf16 %v2663_v14 }
  0xdf   : > { %v1773_v24 = vunpack.i.h.bf16 %v1771_v62 }
  0xe0   : > { %v521_v53 = vsel %vm3611_vm13, %v1777_v32, %v1778_v22 }
  0xe1   : > { %v756_v26 = vpack.c.bf16 %v536_v27, %v521_v53  ;;  %v1768_v27 = vunpack.i.h.bf16 %v2586_v39  ;;  %v3648_v39 = vunpack.i.h.bf16 %v2557_v55 }
  0xe3   : > { %832 = vmatpush.bf16.msra.mxu2 %v756_v26  ;;  %1880 = vrot.lane.b32.xlu1 %v1879_v58, %s3613_s12  ;;  %v1772_v26 = vunpack.i.l.bf16 %v1771_v62 }
  0xe4   : > { %1855 = vrot.lane.b32.xlu2 %v2442_v8, %s3615_s8  ;;  %1870 = vrot.lane.b32.xlu0 %v1869_v25, %s3613_s12  ;;  %v1884_v8 = vpack.i.bf16 %v1703_v47, %v1742_v18  ;;  %v1889_v25 = vpack.i.bf16 %v2735_v35, %v2403_v0  ;;  %v3640_v47 = vunpack.i.l.bf16 %v2557_v55  ;;  %s2272_s8 = smov 2  }
  0xe5   : > { %v1791_v37 = vpop.permute.xlu1 %1790 }
  0xe6   : > { %v595_v60 = vsel %vm3628_vm8, %v1772_v26, %v3640_v47  ;;  %v1786_v53 = vpop.permute.xlu0 %1785  ;;  %v1792_v36 = vunpack.i.l.bf16 %v1791_v37  ;;  %v1793_v58 = vunpack.i.h.bf16 %v1791_v37  ;;  %v3649_v47 = vunpack.i.l.bf16 %v2644_v48 }
  0xe7   : > { %833 = vmatpush.bf16.msra.mxu2 %v753_v56  ;;  %v761_v18 = vpack.c.bf16 %v595_v60, %v580_v4  ;;  %v1787_v38 = vunpack.i.l.bf16 %v1786_v53  ;;  %v1788_v12 = vunpack.i.h.bf16 %v1786_v53  ;;  %v3645_v56 = vunpack.i.h.bf16 %v2636_v13 }
  0xe8   : > { %v565_v10 = vsel %vm3617_vm11, %v1792_v36, %v3644_v23  ;;  %v2783_v57 = vsel %vm3617_vm11, %v3646_v9, %v1793_v58  ;;  %v2795_v13 = vsel %vm3628_vm8, %v3648_v39, %v1773_v24  ;;  %v2837_v58 = vld [vmem:[%s3591_s1] sm:$0xff]  ;;  %vm3620_vm11 = vcmask 588800  }
  0xe9   : > { %804 = vmatpush.bf16.msra.mxu0 %v761_v18  ;;  %v550_v29 = vsel %vm3624_vm10, %v1787_v38, %v3643_v11  ;;  %v2778_v1 = vsel %vm3624_vm10, %v3645_v56, %v1788_v12  ;;  %v785_v11 = vunpack.c.l.b16 %v2837_v58 }
  0xea   : > { %v758_v43 = vpack.c.bf16 %v565_v10, %v550_v29 }
  0xeb   : > { %834 = vmatpush.bf16.msra.mxu2 %v750_v17  ;;  %1900 = vrot.lane.b32.xlu1 %v1899_v59, %s3613_s12  ;;  %v760_v59 = vpack.c.bf16 %v2783_v57, %v2778_v1  ;;  %v3647_v17 = vunpack.i.h.bf16 %v2627_v51  ;;  %v2849_v9 = vpack.c.b16 %v785_v11, %v785_v11 }
  0xec   : > { %1885 = vrot.lane.b32.xlu2 %v1884_v8, %s3613_s12  ;;  %1890 = vrot.lane.b32.xlu0 %v1889_v25, %s3613_s12 }
  0xed   : > { %805 = vmatpush.bf16.msra.mxu0 %v758_v43  ;;  %v2790_v8 = vsel %vm3625_vm9, %v3647_v17, %v1768_v27  ;;  %v1806_v14 = vpop.permute.xlu1 %1805 }
  0xee   : > { %v763_v25 = vpack.c.bf16 %v2795_v13, %v2790_v8  ;;  %v1801_v62 = vpop.permute.xlu0 %1800  ;;  %v1808_v26 = vunpack.i.h.bf16 %v1806_v14  ;;  %v1807_v4 = vunpack.i.l.bf16 %v1806_v14 }
  0xef   : > { %835 = vmatpush.bf16.msra.mxu2 %v747_v46  ;;  %v1803_v44 = vunpack.i.h.bf16 %v1801_v62  ;;  %v1802_v46 = vunpack.i.l.bf16 %v1801_v62 }
  0xf0   : > { %v535_v55 = vsel %vm3612_vm12, %v1807_v4, %v3649_v47 }
  0xf1   : > { %v520_v51 = vsel %vm3611_vm13, %v1802_v46, %v1777_v32  ;;  %v2808_v18 = vsel %vm3611_vm13, %v1778_v22, %v1803_v44  ;;  %v2817_v32 = vpop.permute.xlu2 %1810  ;;  %vm3622_vm13 = vcmask 449536  }
  0xf2   : > { %v755_v60 = vpack.c.bf16 %v535_v55, %v520_v51 }
  0xf3   : > { %836 = vmatpush.bf16.msra.mxu2 %v744_v2  ;;  %v3650_v2 = vunpack.i.h.bf16 %v2644_v48 }
  0xf4   : > { %1895 = vrot.lane.b32.xlu0 %v1894_v34, %s3613_s12  ;;  %806 = vmatpush.bf16.msra.mxu0 %v755_v60  ;;  %s2273_s12 = smov 4  }
  0xf5   : > { %v2813_v31 = vsel %vm3612_vm12, %v3650_v2, %v1808_v26  ;;  %vm3621_vm12 = vcmask 1043456  }
  0xf6   : > { %v757_v52 = vpack.c.bf16 %v2813_v31, %v2808_v18  ;;  %v742_v18 = vpack.c.bf16 %v2710_v15, %v2412_v3 }
  0xf7   : > { %837 = vmatpush.bf16.msra.mxu2 %v741_v16 }
  0xfa   : > { %838 = vmatmul.bf16.vlgmr.msra.gmra.mxu2 %v2849_v9 }
 0x126   : > { %v2819_v34 = vpop.permute.xlu2 %1830 }
 0x127   : > { %v1832_v43 = vunpack.i.l.bf16 %v2819_v34  ;;  %v1833_v26 = vunpack.i.h.bf16 %v2819_v34 }
 0x12e   : > { %v2821_v37 = vpop.permute.xlu2 %1840 }
 0x12f   : > { %v1842_v4 = vunpack.i.l.bf16 %v2821_v37 }
 0x135   : > { %v2823_v53 = vpop.permute.xlu1 %1825 }
 0x136   : > { %v2825_v45 = vpop.permute.xlu0 %1815  ;;  %v2827_v22 = vpop.permute.xlu2 %1850  ;;  %v1828_v29 = vunpack.i.h.bf16 %v2823_v53  ;;  %v1827_v23 = vunpack.i.l.bf16 %v2823_v53 }
 0x137   : > { %v1818_v48 = vunpack.i.h.bf16 %v2825_v45  ;;  %v1817_v36 = vunpack.i.l.bf16 %v2825_v45 }
 0x138   : > { %v708_v51 = vsel %vm3622_vm13, %v1828_v29, %v1832_v43 }
 0x139   : > { %v711_v38 = vsel %vm3622_vm13, %v1817_v36, %v1818_v48 }
 0x13a   : > { %v777_v16 = vpack.c.bf16 %v711_v38, %v711_v38 }
 0x13c   : > { %v799_v12 = vsel %vm3621_vm12, %v777_v16, 0 }
 0x13d   : > { %846 = vmatpush.bf16.msra.mxu3 %v799_v12  ;;  %v2843_v10 = vpop.permute.xlu1 %1835 }
 0x13e   : > { %v1821_v27 = vpop.permute.xlu0 %1820  ;;  %v2846_v24 = vpop.permute.xlu2 %1855  ;;  %v1838_v56 = vunpack.i.h.bf16 %v2843_v10  ;;  %v1837_v62 = vunpack.i.l.bf16 %v2843_v10  ;;  %v2271_v10 = vmov 0  }
 0x13f   : > { %v1823_v17 = vunpack.i.h.bf16 %v1821_v27  ;;  %v1822_v39 = vunpack.i.l.bf16 %v1821_v27  ;;  %v1857_v14 = vunpack.i.l.bf16 %v2846_v24  ;;  %1904 = vset.pattern.permute.xlu2 %v2271_v10  ;;  %2155 = vset.pattern.permute.xlu0 %v2271_v10 }
 0x140   : > { %v699_v38 = vsel %vm3622_vm13, %v1833_v26, %v1837_v62 }
 0x141   : > { %v505_v44 = vsel %vm3623_vm15, %v1857_v14, %v1797_v33  ;;  %v705_v46 = vsel %vm3622_vm13, %v1823_v17, %v1827_v23  ;;  %v710_v47 = vsel %vm3622_vm13, %v1822_v39, %v1817_v36  ;;  %v702_v33 = vsel %vm3622_vm13, %v1838_v56, %v1842_v4 }
 0x142   : > { %v752_v55 = vpack.c.bf16 %v505_v44, %v2594_v6  ;;  %v774_v60 = vpack.c.bf16 %v708_v51, %v705_v46  ;;  %v776_v2 = vpack.c.bf16 %v710_v47, %v710_v47  ;;  %v771_v36 = vpack.c.bf16 %v702_v33, %v699_v38 }
 0x143   : > { %v1843_v6 = vunpack.i.h.bf16 %v2821_v37  ;;  %v3651_v39 = vpack.c.bf16 %v2611_v54, %v2614_v7  ;;  %v3652_v51 = vpack.c.bf16 %v2526_v40, %v2536_v42  ;;  %v1852_v38 = vunpack.i.l.bf16 %v2827_v22 }
 0x144   : > { %807 = vmatpush.bf16.msra.mxu0 %v752_v55  ;;  %847 = vmatpush.bf16.msra.mxu3 %v774_v60  ;;  %v796_v16 = vsel %vm3621_vm12, %v776_v2, 0  ;;  %v1853_v2 = vunpack.i.h.bf16 %v2827_v22  ;;  %v3653_v40 = vpack.c.bf16 %v2479_v19, %v2484_v20 }
 0x145   : > { %820 = vmatpush.bf16.msra.mxu1 %v796_v16  ;;  %v1866_v12 = vpop.permute.xlu1 %1865  ;;  %v704_v14 = vsel %vm3622_vm13, %v1843_v6, %v1823_v17 }
 0x146   : > { %v1846_v11 = vpop.permute.xlu0 %1845  ;;  %v1867_v55 = vunpack.i.l.bf16 %v1866_v12  ;;  %v1868_v16 = vunpack.i.h.bf16 %v1866_v12 }
 0x147   : > { %v1847_v27 = vunpack.i.l.bf16 %v1846_v11  ;;  %v1848_v47 = vunpack.i.h.bf16 %v1846_v11 }
 0x148   : > { %808 = vmatpush.bf16.msra.mxu0 %v3651_v39  ;;  %848 = vmatpush.bf16.msra.mxu3 %v771_v36  ;;  %v701_v11 = vsel %vm3622_vm13, %v1867_v55, %v1838_v56  ;;  %v1813_v56 = vunpack.i.h.bf16 %v2817_v32  ;;  %v1886_v55 = vpop.permute.xlu2 %1885 }
 0x149   : > { %v707_v44 = vsel %vm3622_vm13, %v1847_v27, %v1828_v29  ;;  %v693_v36 = vsel %vm3622_vm13, %v1848_v47, %v1852_v38  ;;  %v740_v27 = vpack.c.bf16 %v2735_v35, %v2403_v0 }
 0x14a   : > { %v773_v46 = vpack.c.bf16 %v707_v44, %v704_v14  ;;  %v712_v44 = vsel %vm3622_vm13, %v1818_v48, %v1868_v16  ;;  %v1887_v16 = vunpack.i.l.bf16 %v1886_v55 }
 0x14c   : > { %809 = vmatpush.bf16.msra.mxu0 %v3652_v51  ;;  %821 = vmatpush.bf16.msra.mxu1 %v773_v46 }
 0x14d   : > { %v1876_v60 = vpop.permute.xlu1 %1875 }
 0x14e   : > { %v2885_v54 = vpop.permute.xlu0 %1860  ;;  %v1878_v29 = vunpack.i.h.bf16 %v1876_v60  ;;  %v1877_v33 = vunpack.i.l.bf16 %v1876_v60 }
 0x14f   : > { %v1863_v7 = vunpack.i.h.bf16 %v2885_v54  ;;  %v1862_v17 = vunpack.i.l.bf16 %v2885_v54 }
 0x150   : > { %810 = vmatpush.bf16.msra.mxu0 %v3653_v40  ;;  %v692_v19 = vsel %vm3622_vm13, %v1877_v33, %v1848_v47  ;;  %v695_v20 = vsel %vm3622_vm13, %v1878_v29, %v1853_v2  ;;  %v786_v47 = vunpack.c.h.b16 %v2837_v58  ;;  %v1888_v33 = vunpack.i.h.bf16 %v1886_v55 }
 0x151   : > { %v698_v42 = vsel %vm3622_vm13, %v1863_v7, %v1833_v26  ;;  %v696_v6 = vsel %vm3622_vm13, %v1853_v2, %v1862_v17  ;;  %v1812_v26 = vunpack.i.l.bf16 %v2817_v32  ;;  %v767_v0 = vpack.c.bf16 %v695_v20, %v692_v19  ;;  %v246_v20 = vld [vmem:[%s3592_s2] sm:$0xff] }
 0x152   : > { %v770_v12 = vpack.c.bf16 %v701_v11, %v698_v42  ;;  %v768_v39 = vpack.c.bf16 %v696_v6, %v693_v36  ;;  %v778_v7 = vpack.c.bf16 %v712_v44, %v712_v44  ;;  %v788_v48 = vpack.c.b16 %v786_v47, %v786_v47  ;;  %781 = vperm.xlu2 %1904, %v246_v20  }
 0x153   : > { %v687_v32 = vsel %vm3622_vm13, %v1812_v26, %v1813_v56  ;;  %v703_v53 = vsel %vm3622_vm13, %v1842_v4, %v1888_v33  ;;  %v1858_v44 = vunpack.i.h.bf16 %v2846_v24 }
 0x154   : > { %811 = vmatpush.bf16.msra.mxu0 %v740_v27  ;;  %822 = vmatpush.bf16.msra.mxu1 %v770_v12  ;;  %v802_v40 = vsel %vm3621_vm12, %v778_v7, 0  ;;  %v700_v12 = vsel %vm3622_vm13, %v1837_v62, %v1887_v16 }
 0x155   : > { %849 = vmatpush.bf16.msra.mxu3 %v768_v39  ;;  %v1881_v14 = vpop.permute.xlu1 %1880  ;;  %v772_v39 = vpack.c.bf16 %v703_v53, %v700_v12  ;;  %v507_v24 = vsel %vm3623_vm15, %v1798_v50, %v1858_v44  ;;  %v3656_v50 = vpack.c.bf16 %v2502_v28, %v2511_v30 }
 0x156   : > { %v1871_v46 = vpop.permute.xlu0 %1870  ;;  %v1883_v60 = vunpack.i.h.bf16 %v1881_v14  ;;  %v1882_v2 = vunpack.i.l.bf16 %v1881_v14  ;;  %v754_v57 = vpack.c.bf16 %v507_v24, %v2577_v5 }
 0x157   : > { %v1873_v35 = vunpack.i.h.bf16 %v1871_v46  ;;  %v1872_v51 = vunpack.i.l.bf16 %v1871_v46  ;;  %812 = vmatmul.bf16.vlgmr.msra.gmra.mxu0 %v2849_v9 }
 0x158   : > { %823 = vmatpush.bf16.msra.mxu1 %v767_v0  ;;  %v706_v58 = vsel %vm3622_vm13, %v1827_v23, %v1882_v2  ;;  %v709_v42 = vsel %vm3622_vm13, %v1832_v43, %v1883_v60  ;;  %v248_v2 = vlaneseq }
 0x159   : > { %v690_v29 = vsel %vm3622_vm13, %v1872_v51, %v1873_v35  ;;  %v775_v27 = vpack.c.bf16 %v709_v42, %v706_v58 }
 0x15a   : > { %v765_v45 = vpack.c.bf16 %v690_v29, %v687_v32  ;;  %v2991_v7 = vand.u32 127, %v248_v2 }
 0x15c   : > { %850 = vmatpush.bf16.msra.mxu3 %v765_v45  ;;  %v250_v32 = vadd.s32 128, %v2991_v7  ;;  %vm914_vm9 = vcmp.lt.s32.totalorder %v2991_v7, 4  ;;  %vm891_vm14 = vcmp.lt.s32.totalorder %v2991_v7, 2 }
 0x15d   : > { %v1901_v19 = vpop.permute.xlu1 %1900 }
 0x15e   : > { %v1891_v11 = vpop.permute.xlu0 %1890  ;;  %v1903_v62 = vunpack.i.h.bf16 %v1901_v19  ;;  %v1902_v4 = vunpack.i.l.bf16 %v1901_v19  ;;  %v284_v29 = vand.u32 65535, %v250_v32  ;;  %v285_v45 = vshrl.u32 %v250_v32, 16 }
 0x15f   : > { %v1893_v36 = vunpack.i.h.bf16 %v1891_v11  ;;  %v1892_v6 = vunpack.i.l.bf16 %v1891_v11  ;;  %1572 = vmatmul.msk.bf16.vlgmr.msra.gmra.mxu3 %vm3620_vm11, %v788_v48  ;;  %v2995_v11 = vadd.s32 256, %v2991_v7 }
 0x160   : > { %872 = vmatpush.bf16.msrb.mxu3 %v802_v40  ;;  %v688_v46 = vsel %vm3622_vm13, %v1813_v56, %v1902_v4  ;;  %v691_v0 = vsel %vm3622_vm13, %v1873_v35, %v1903_v62  ;;  %v288_v33 = vmul.u32 43690, %v284_v29  ;;  %v289_v16 = vmul.u32 43691, %v285_v45 }
 0x161   : > { %v686_v34 = vsel %vm3622_vm13, %v1892_v6, %v1812_v26  ;;  %v689_v23 = vsel %vm3622_vm13, %v1893_v36, %v1872_v51  ;;  %v766_v1 = vpack.c.bf16 %v691_v0, %v688_v46  ;;  %v290_v36 = vmul.u32 43690, %v285_v45 }
 0x162   : > { %v764_v43 = vpack.c.bf16 %v689_v23, %v686_v34  ;;  %v291_v40 = vshll.u32 %v288_v33, 16  ;;  %v293_v58 = vshll.u32 %v289_v16, 16  ;;  %v313_v12 = vand.u32 65535, %v2995_v11 }
 0x163   : > { %v256_v23 = vshrl.u32 %v2991_v7, 16  ;;  %v292_v20 = vshrl.u32 %v288_v33, 16 }
 0x164   : > { %873 = vmatpush.bf16.msrb.mxu3 %v775_v27  ;;  %824 = vmatpush.bf16.msra.mxu1 %v764_v43  ;;  %v255_v27 = vand.u32 65535, %v2991_v7  ;;  %v317_v19 = vmul.u32 43690, %v313_v12 }
 0x165   : > { %v260_v4 = vmul.u32 43691, %v256_v23 }
 0x166   : > { %v1896_v37 = vpop.permute.xlu0 %1895  ;;  %v259_v43 = vmul.u32 43690, %v255_v27  ;;  %v258_v62 = vmul.u32 43691, %v255_v27 }
 0x167   : > { %v1898_v26 = vunpack.i.h.bf16 %v1896_v37  ;;  %v1897_v14 = vunpack.i.l.bf16 %v1896_v37  ;;  %1571 = vmatmul.msk.bf16.vlgmr.msra.gmra.mxu1 %vm3620_vm11, %v788_v48  ;;  %v264_v46 = vshll.u32 %v260_v4, 16 }
 0x168   : > { %856 = vmatpush.bf16.msrb.mxu1 %v763_v25  ;;  %874 = vmatpush.bf16.msrb.mxu3 %v772_v39  ;;  %v314_v39 = vshrl.u32 %v2995_v11, 16 }
 0x169   : > { %v694_v8 = vsel %vm3622_vm13, %v1852_v38, %v1897_v14  ;;  %v697_v13 = vsel %vm3622_vm13, %v1862_v17, %v1898_v26  ;;  %v262_v26 = vshll.u32 %v259_v43, 16  ;;  %v316_v14 = vmul.u32 43691, %v313_v12 }
 0x16a   : > { %v769_v25 = vpack.c.bf16 %v697_v13, %v694_v8  ;;  %v318_v44 = vmul.u32 43691, %v314_v39  ;;  %v320_v8 = vshll.u32 %v317_v19, 16  ;;  %v294_v13 = vshrl.u32 %v289_v16, 16 }
 0x16b   : > { %v268_v0 = vadd.s32 %v262_v26, %v258_v62 }
 0x16c   : > { %857 = vmatpush.bf16.msrb.mxu1 %v760_v59  ;;  %875 = vmatpush.bf16.msrb.mxu3 %v769_v25  ;;  %v3654_v59 = vpack.c.bf16 %v2607_v21, %v2572_v63  ;;  %v322_v24 = vshll.u32 %v318_v44, 16 }
 0x16d   : > { %vm270_vm13 = vc.u32 %v268_v0, %v264_v46 }
 0x170   : > { %858 = vmatpush.bf16.msrb.mxu1 %v757_v52  ;;  %876 = vmatpush.bf16.msrb.mxu3 %v766_v1  ;;  %v326_v1 = vadd.s32 %v320_v8, %v316_v14 }
 0x172   : > { %vm328_vm15 = vc.u32 %v326_v1, %v322_v24 }
 0x173   : > { %1573 = vmatmul.msk.bf16.vlgmr.msrb.gmra.mxu3 %vm3620_vm11, %v788_v48  ;;  %v287_v48 = vmul.u32 43691, %v284_v29 }
 0x174   : > { %859 = vmatpush.bf16.msrb.mxu1 %v754_v57  ;;  %v261_v57 = vmul.u32 43690, %v256_v23  ;;  %v2275_v23 = vmov 0.0  }
 0x175   : > { %vm295_vm11 = vc.u32 %v287_v48, %v291_v40  ;;  %v297_v42 = vadd.s32 %v291_v40, %v287_v48 }
 0x176   : > { %v296_v6 = vsel %vm295_vm11, 1, %v2271_v10  ;;  %vm266_vm11 = vc.u32 %v258_v62, %v262_v26 }
 0x177   : > { %vm299_vm12 = vc.u32 %v297_v42, %v293_v58  ;;  %v298_v53 = vadd.s32 %v296_v6, %v290_v36 }
 0x178   : > { %860 = vmatpush.bf16.msrb.mxu1 %v3654_v59  ;;  %v300_v34 = vsel %vm299_vm12, 1, %v2271_v10  ;;  %vm324_vm12 = vc.u32 %v316_v14, %v320_v8 }
 0x179   : > { %v302_v37 = vadd.s32 %v300_v34, %v298_v53 }
 0x17b   : > { %v303_v25 = vadd.s32 %v302_v37, %v292_v20 }
 0x17c   : > { %861 = vmatpush.bf16.msrb.mxu1 %v3655_v61  ;;  %v267_v61 = vsel %vm266_vm11, 1, %v2271_v10 }
 0x17d   : > { %v839_v5 = vpop.f32.mrf.mxu2  ;;  %v304_v59 = vadd.s32 %v303_v25, %v294_v13 }
 0x180   : > { %862 = vmatpush.bf16.msrb.mxu1 %v3656_v50  ;;  %v319_v50 = vmul.u32 43690, %v314_v39 }
 0x184   : > { %863 = vmatpush.bf16.msrb.mxu1 %v742_v18  ;;  %v325_v18 = vsel %vm324_vm12, 1, %v2271_v10  ;;  %vm901_vm12 = vcmp.lt.s32.totalorder %v2991_v7, 126 }
 0x185   : > { %v841_v31 = vpop.f32.mrf.mxu2 }
 0x186   : > { %v305_v31 = vshrl.u32 %v304_v59, 4 }
 0x187   : > { %864 = vmatmul.bf16.vlgmr.msrb.gmra.mxu1 %v2849_v9 }
 0x1ac   : > { %v782_v22 = vpop.permute.xlu2 %781 }
 0x1ad   : > { %v840_v63 = vadd.f32 %v839_v5, %v782_v22  ;;  %v269_v5 = vadd.s32 %v267_v61, %v261_v57 }
 0x1d4   : > { %v813_v52 = vpop.f32.mrf.mxu0 }
 0x1d5   : > { %v814_v38 = vadd.f32 %v813_v52, %v782_v22  ;;  %v271_v52 = vsel %vm270_vm13, 1, %v2271_v10 }
 0x1dc   : > { %v815_v21 = vpop.f32.mrf.mxu0 }
 0x1dd   : > { %v329_v21 = vsel %vm328_vm15, 1, %v2271_v10 }
 0x1e2   : > { %v852_v54 = vpop.f32.mrf.mxu3 }
 0x1e3   : > { %v853_v41 = vadd.f32 %v852_v54, %v840_v63  ;;  %v273_v54 = vadd.s32 %v271_v52, %v269_v5 }
 0x1e4   : > { %v826_v49 = vpop.f32.mrf.mxu1 }
 0x1e5   : > { %v827_v17 = vadd.f32 %v826_v49, %v814_v38  ;;  %v2970_v56 = vmax.f32 %v853_v41, 0.0  ;;  %v263_v38 = vshrl.u32 %v259_v43, 16  ;;  %v306_v41 = vmul.u32 24, %v305_v31 }
 0x1e7   : > { %v2972_v28 = vmax.f32 %v827_v17, 0.0  ;;  %887 = vrot.lane.b32.xlu1 %v2970_v56, %s2272_s8  ;;  %910 = vrot.lane.b32.xlu2 %v2970_v56, %s2273_s12  ;;  %v321_v17 = vshrl.u32 %v317_v19, 16 }
 0x1e9   : > { %885 = vrot.lane.b32.xlu0 %v2972_v28, %s2272_s8 }
 0x1ea   : > { %v854_v3 = vpop.f32.mrf.mxu3 }
 0x1ec   : > { %v828_v30 = vpop.f32.mrf.mxu1 }
 0x1ed   : > { %v265_v30 = vshrl.u32 %v260_v4, 16 }
 0x1ef   : > { %897 = vrot.lane.b32.xlu1 %v2970_v56, %s2255_s15 }
 0x1f1   : > { %895 = vrot.lane.b32.xlu0 %v2972_v28, %s2255_s15 }
 0x1f6   : > { %v878_v15 = vpop.f32.mrf.mxu3 }
 0x1f9   : > { %908 = vrot.lane.b32.xlu0 %v2972_v28, %s2273_s12 }
 0x1fe   : > { %v880_v9 = vpop.f32.mrf.mxu3 }
 0x1ff   : > { %v307_v9 = vsub.s32 %v250_v32, %v306_v41 }
 0x201   : > { %924 = vrot.lane.b32.xlu0 %v2972_v28, %s2274_s11  ;;  %vm340_vm13 = vcmp.ne.s32.totalorder %v307_v9, 0  ;;  %vm343_vm15 = vcmp.lt.s32.totalorder %v307_v9, 0  ;;  %v349_v45 = vadd.s32 24, %v307_v9 }
 0x202   : > { %vm346_vm11 = vmand %vm343_vm15, %vm340_vm13  ;;  %vm366_vm13 = vcmask 1048320  }
 0x203   : > { %v352_v16 = vsel %vm346_vm11, %v349_v45, %v307_v9  ;;  %367 = vst.msk [vmem:[#allocation2 + $0x18] sm:$0xff] %vm366_vm13, %v2275_v23  ;;  %vm930_vm11 = vcmp.lt.s32.totalorder %v2991_v7, 6 }
 0x204   : > { %v865_v35 = vpop.f32.mrf.mxu1  ;;  %vm355_vm10 = vcmp.eq.s32.totalorder %v352_v16, 0  ;;  %vm361_vm15 = vcmp.eq.s32.totalorder %v352_v16, 18  ;;  %vm358_vm2 = vcmp.eq.s32.totalorder %v352_v16, 1  ;;  %vm364_vm6 = vcmp.eq.s32.totalorder %v352_v16, 19 }
 0x205   : > { %v866_v51 = vadd.f32 %v865_v35, %v782_v22  ;;  %v327_v22 = vadd.s32 %v325_v18, %v319_v50  ;;  %v323_v35 = vshrl.u32 %v318_v44, 16 }
 0x207   : > { %v879_v47 = vadd.f32 %v878_v15, %v866_v51  ;;  %v331_v3 = vadd.s32 %v329_v21, %v327_v22  ;;  %v274_v15 = vadd.s32 %v273_v54, %v263_v38 }
 0x209   : > { %v2983_v55 = vmax.f32 %v879_v47, 0.0  ;;  %v332_v51 = vadd.s32 %v331_v3, %v321_v17  ;;  %v275_v2 = vadd.s32 %v274_v15, %v265_v30 }
 0x20b   : > { %889 = vrot.lane.b32.xlu2 %v2983_v55, %s2272_s8  ;;  %912 = vrot.lane.b32.xlu1 %v2983_v55, %s2273_s12  ;;  %v333_v29 = vadd.s32 %v332_v51, %v323_v35  ;;  %v276_v33 = vshrl.u32 %v275_v2, 4  ;;  %s2277_s8 = smov 96   ;;  %s2278_s12 = smov 16  }
 0x20c   : > { %v867_v60 = vpop.f32.mrf.mxu1 }
 0x20d   : > { %v334_v48 = vshrl.u32 %v333_v29, 4  ;;  %v277_v58 = vmul.u32 24, %v276_v33 }
 0x20f   : > { %v335_v42 = vmul.u32 24, %v334_v48  ;;  %v278_v12 = vsub.s32 %v2991_v7, %v277_v58 }
 0x211   : > { %v336_v43 = vsub.s32 %v2995_v11, %v335_v42  ;;  %vm339_vm8 = vcmp.ne.s32.totalorder %v278_v12, 0  ;;  %vm342_vm7 = vcmp.lt.s32.totalorder %v278_v12, 0  ;;  %v348_v37 = vadd.s32 24, %v278_v12 }
 0x213   : > { %899 = vrot.lane.b32.xlu2 %v2983_v55, %s2255_s15  ;;  %928 = vrot.lane.b32.xlu1 %v2983_v55, %s2274_s11  ;;  %vm341_vm4 = vcmp.ne.s32.totalorder %v336_v43, 0  ;;  %vm344_vm5 = vcmp.lt.s32.totalorder %v336_v43, 0  ;;  %v350_v26 = vadd.s32 24, %v336_v43 }
 0x214   : > { %vm347_vm13 = vmand %vm344_vm5, %vm341_vm4 }
 0x215   : > { %v353_v44 = vsel %vm347_vm13, %v350_v26, %v336_v43  ;;  %vm3661_vm13 = vcmask 1014784  }
 0x216   : > { %vm356_vm3 = vcmp.eq.s32.totalorder %v353_v44, 0  ;;  %vm362_vm4 = vcmp.eq.s32.totalorder %v353_v44, 18  ;;  %vm359_vm5 = vcmp.eq.s32.totalorder %v353_v44, 1 }
 0x21b   : > { %926 = vrot.lane.b32.xlu2 %v2970_v56, %s2274_s11  ;;  %s2276_s11 = smov 48  }
 0x241   : > { %v3007_v63 = vpop.permute.xlu2 %910 }
 0x259   : > { %v3011_v47 = vpop.permute.xlu1 %887 }
 0x25b   : > { %v3009_v49 = vpop.permute.xlu0 %885 }
 0x25c   : > { %v893_v27 = vsel %vm891_vm14, %v3009_v49, %v3011_v47 }
 0x261   : > { %v898_v40 = vpop.permute.xlu1 %897 }
 0x263   : > { %v896_v10 = vpop.permute.xlu0 %895 }
 0x264   : > { %v903_v25 = vsel %vm901_vm12, %v896_v10, %v898_v40 }
 0x265   : > { %v890_v60 = vpop.permute.xlu2 %889 }
 0x266   : > { %v894_v13 = vsel %vm891_vm14, %v890_v60, %v3009_v49  ;;  %v892_v24 = vsel %vm891_vm14, %v3011_v47, %v890_v60  ;;  %vm968_vm14 = vcmask 589184  }
 0x26b   : > { %v909_v6 = vpop.permute.xlu0 %908 }
 0x26c   : > { %v916_v34 = vsel %vm914_vm9, %v909_v6, %v3007_v63 }
 0x26d   : > { %v900_v32 = vpop.permute.xlu2 %899 }
 0x26e   : > { %v902_v36 = vsel %vm901_vm12, %v898_v40, %v900_v32 }
 0x26f   : > { %v906_v53 = vsel %vm355_vm10, %v902_v36, %v893_v27  ;;  %vm345_vm10 = vmand %vm342_vm7, %vm339_vm8  ;;  %vm365_vm7 = vcmp.eq.s32.totalorder %v353_v44, 19 }
 0x270   : > { %v919_v39 = vsel %vm361_vm15, %v916_v34, %v906_v53  ;;  %v351_v14 = vsel %vm345_vm10, %v348_v37, %v278_v12  ;;  %vm963_vm10 = vcmask 392384  }
 0x271   : > { %v922_v4 = vsel %vm358_vm2, %v2970_v56, %v919_v39  ;;  %vm354_vm15 = vcmp.eq.s32.totalorder %v351_v14, 0  ;;  %v904_v56 = vsel %vm901_vm12, %v900_v32, %v896_v10  ;;  %vm360_vm2 = vcmp.eq.s32.totalorder %v351_v14, 18 }
 0x272   : > { %v905_v1 = vsel %vm354_vm15, %v903_v25, %v894_v13  ;;  %v907_v57 = vsel %vm356_vm3, %v904_v56, %v892_v24  ;;  %vm363_vm8 = vcmp.eq.s32.totalorder %v351_v14, 19  ;;  %vm946_vm3 = vcmask 392192  }
 0x273   : > { %v925_v20 = vpop.permute.xlu0 %924  ;;  %vm973_vm12 = vcmask 785984   ;;  %vm3662_vm15 = vcmask 826368  }
 0x275   : > { %v927_v19 = vpop.permute.xlu2 %926 }
 0x276   : > { %v932_v62 = vsel %vm930_vm11, %v925_v20, %v927_v19 }
 0x277   : > { %v935_v11 = vsel %vm364_vm6, %v932_v62, %v922_v4  ;;  %vm357_vm6 = vcmp.eq.s32.totalorder %v351_v14, 1 }
 0x278   : > { %942 = vrot.lane.b32.xlu1 %v935_v11, %s2276_s11 }
 0x27d   : > { %v913_v8 = vpop.permute.xlu1 %912 }
 0x27e   : > { %v915_v46 = vsel %vm914_vm9, %v3007_v63, %v913_v8  ;;  %v917_v0 = vsel %vm914_vm9, %v913_v8, %v909_v6  ;;  %vm953_vm9 = vcmask 1047936  }
 0x27f   : > { %v918_v59 = vsel %vm360_vm2, %v917_v0, %v905_v1  ;;  %v920_v61 = vsel %vm362_vm4, %v915_v46, %v907_v57  ;;  %vm3663_vm2 = vmmov %vm3662_vm15  ;;  %vm3665_vm4 = vcmask 834560  }
 0x280   : > { %v923_v31 = vsel %vm359_vm5, %v2983_v55, %v920_v61  ;;  %v921_v52 = vsel %vm357_vm6, %v2972_v28, %v918_v59  ;;  %vm3666_vm5 = vmmov %vm3665_vm4  ;;  %vm3667_vm6 = vcmask 842752  }
 0x285   : > { %v929_v50 = vpop.permute.xlu1 %928 }
 0x286   : > { %v931_v18 = vsel %vm930_vm11, %v927_v19, %v929_v50  ;;  %v933_v5 = vsel %vm930_vm11, %v929_v50, %v925_v20  ;;  %vm961_vm11 = vcmask 195584  }
 0x287   : > { %v936_v22 = vsel %vm365_vm7, %v931_v18, %v923_v31  ;;  %v934_v21 = vsel %vm363_vm8, %v933_v5, %v921_v52  ;;  %vm3668_vm7 = vmmov %vm3667_vm6 }
 0x288   : > { %944 = vrot.lane.b32.xlu2 %v936_v22, %s2276_s11  ;;  %940 = vrot.lane.b32.xlu0 %v934_v21, %s2276_s11  ;;  %vm3669_vm8 = vmmov %vm3667_vm6 }
 0x289   : > { %965 = vrot.lane.b32.xlu1 %v936_v22, %s2277_s8 }
 0x290   : > { %970 = vrot.lane.b32.xlu2 %v936_v22, %s2278_s12  ;;  %958 = vrot.lane.b32.xlu0 %v934_v21, %s2268_s14 }
 0x2e2   : > { %v945_v63 = vpop.permute.xlu2 %944 }
 0x2e3   : > { %957 = vst.msk [vmem:[#allocation2 + $0x18] sm:$0xff] %vm946_vm3, %v945_v63 }
 0x2ea   : > { %v943_v7 = vpop.permute.xlu1 %942  ;;  %v971_v41 = vpop.permute.xlu2 %970 }
 0x2eb   : > { %v3056_v38 = vsel %vm946_vm3, %v943_v7, %v945_v63 }
 0x2fa   : > { %v941_v28 = vpop.permute.xlu0 %940 }
 0x2fb   : > { %v3058_v55 = vsel %vm946_vm3, %v941_v28, %v943_v7  ;;  %954 = vst.msk [vmem:[#allocation2] sm:$0xff] %vm953_vm9, %v941_v28  ;;  %v966_v54 = vpop.permute.xlu1 %965  ;;  %vm3670_vm3 = vmmov %vm3665_vm4  ;;  %vm3671_vm9 = vcmask 859136  }
 0x2fc   : > { %969 = vst.msk [vmem:[#allocation2 + $0x18] sm:$0xff] %vm968_vm14, %v966_v54  ;;  %vm3672_vm14 = vmmov %vm3671_vm9 }
 0x2fd   : > { %974 = vst.msk [vmem:[#allocation2 + $0x18] sm:$0xff] %vm973_vm12, %v971_v41  ;;  %vm3673_vm12 = vcmask 457728  }
 0x302   : > { %v959_v49 = vpop.permute.xlu0 %958 }
 0x303   : > { %962 = vst.msk [vmem:[#allocation2] sm:$0xff] %vm961_vm11, %v959_v49  ;;  %vm3674_vm11 = vcmask 850944  }
 0x304   : > { %964 = vst.msk [vmem:[#allocation2] sm:$0xff] %vm963_vm10, %v934_v21  ;;  %v978_v17 = vld [vmem:[#allocation2 + $0x18] sm:$0xff]  ;;  %vm3675_vm10 = vmmov %vm3661_vm13 }
 0x305   : > { %v3061_v3 = vpack.i.bf16 %v978_v17, %v3056_v38 }
 0x307   : > { %1911 = vrot.lane.b32.xlu1 %v3061_v3, %s2256_s16 }
 0x30b   : > { %v3065_v30 = vld [vmem:[#allocation2] sm:$0xff] }
 0x30c   : > { %v3069_v15 = vpack.i.bf16 %v3058_v55, %v3065_v30 }
 0x30e   : > { %1916 = vrot.lane.b32.xlu2 %v3069_v15, %s2255_s15  ;;  %1906 = vrot.lane.b32.xlu0 %v3069_v15, %s2256_s16  ;;  %s3659_s16 = smov 79  }
 0x30f   : > { %1926 = vrot.lane.b32.xlu1 %v3069_v15, %s2254_s13 }
 0x316   : > { %1931 = vrot.lane.b32.xlu2 %v3061_v3, %s2254_s13  ;;  %1921 = vrot.lane.b32.xlu0 %v3061_v3, %s2255_s15  ;;  %s3657_s13 = smov 105   ;;  %s3658_s15 = smov 77  }
 0x317   : > { %1941 = vrot.lane.b32.xlu1 %v3061_v3, %s2258_s17 }
 0x31e   : > { %1946 = vrot.lane.b32.xlu2 %v3069_v15, %s2257_s29  ;;  %1936 = vrot.lane.b32.xlu0 %v3069_v15, %s2258_s17  ;;  %s3664_s17 = smov 55  }
 0x31f   : > { %1956 = vrot.lane.b32.xlu1 %v3061_v3, %s2259_s23 }
 0x326   : > { %1961 = vrot.lane.b32.xlu2 %v3069_v15, %s2260_s25  ;;  %1951 = vrot.lane.b32.xlu0 %v3069_v15, %s2259_s23 }
 0x327   : > { %1971 = vrot.lane.b32.xlu1 %v3069_v15, %s2261_s26 }
 0x32e   : > { %1976 = vrot.lane.b32.xlu2 %v3061_v3, %s2261_s26  ;;  %1966 = vrot.lane.b32.xlu0 %v3061_v3, %s2260_s25  ;;  %s2206_s25 = scalar_lea.hbm %s3595_s5, 48 }
 0x32f   : > { %1986 = vrot.lane.b32.xlu1 %v3069_v15, %s3657_s13 }
 0x336   : > { %1991 = vrot.lane.b32.xlu2 %v3061_v3, %s3657_s13  ;;  %1981 = vrot.lane.b32.xlu0 %v3061_v3, %s2257_s29  ;;  %s3660_s29 = smov 100  }
 0x337   : > { %2001 = vrot.lane.b32.xlu1 %v3069_v15, %s2263_s28 }
 0x33e   : > { %2006 = vrot.lane.b32.xlu2 %v3069_v15, %s2265_s10  ;;  %1996 = vrot.lane.b32.xlu0 %v3069_v15, %s2264_s9 }
 0x33f   : > { %2026 = vrot.lane.b32.xlu1 %v3061_v3, %s2264_s9  ;;  %s1581_s9 = smul.u32 24, %s2395_s7 }
 0x346   : > { %2016 = vrot.lane.b32.xlu2 %v3069_v15, %s2268_s14  ;;  %2011 = vrot.lane.b32.xlu0 %v3069_v15, %s3658_s15 }
 0x347   : > { %2046 = vrot.lane.b32.xlu1 %v3061_v3, %s3658_s15 }
 0x34e   : > { %2031 = vrot.lane.b32.xlu2 %v3061_v3, %s2263_s28  ;;  %2021 = vrot.lane.b32.xlu0 %v3069_v15, %s3659_s16 }
 0x34f   : > { %2051 = vrot.lane.b32.xlu1 %v3061_v3, %s2268_s14  ;;  %s1582_s14 = smul.u32 24, %s2330_s22 }
 0x351   : > { %s1488_s12 = scalar_lea.hbm %s3595_s5, %s1582_s14 }
 0x352   : > { %s1492_s15 = sshll.u32 %s1488_s12, 4  ;;  %s1493_s15 = int_to_ptr.hbm [resolvable:$true] %s1492_s15 }
 0x356   : > { %2036 = vrot.lane.b32.xlu2 %v3069_v15, %s3660_s29  ;;  %2041 = vrot.lane.b32.xlu0 %v3061_v3, %s2265_s10  ;;  %s242_s10 = scalar_lea.vmem [#allocation6], %s1581_s9 }
 0x357   : > { %s1490_s13 = sshll.u32 %s242_s10, 4  ;;  %s1491_s13 = int_to_ptr.vmem [resolvable:$true] %s1490_s13 }
 0x35e   : > { %2056 = vrot.lane.b32.xlu2 %v3061_v3, %s3659_s16  ;;  %s1477_s16 = scalar_lea.sflag [#allocation5], %s2395_s7 }
 0x368   : > { %v3131_v9 = vpop.permute.xlu2 %1916 }
 0x369   : > { %v1919_v32 = vunpack.i.h.bf16 %v3131_v9 }
 0x370   : > { %v3133_v35 = vpop.permute.xlu2 %1931 }
 0x371   : > { %v1934_v29 = vunpack.i.h.bf16 %v3133_v35  ;;  %v1933_v45 = vunpack.i.l.bf16 %v3133_v35 }
 0x373   : > { %v3158_v36 = vsel %vm414_vm0, %v1933_v45, %v1934_v29 }
 0x378   : > { %v3135_v51 = vpop.permute.xlu2 %1946 }
 0x379   : > { %v3137_v47 = vpop.permute.xlu1 %1911 }
 0x380   : > { %v3139_v60 = vpop.permute.xlu0 %1906  ;;  %v1962_v2 = vpop.permute.xlu2 %1961 }
 0x381   : > { %v3141_v10 = vpop.permute.xlu1 %1926  ;;  %v1964_v0 = vunpack.i.h.bf16 %v1962_v2  ;;  %v1963_v24 = vunpack.i.l.bf16 %v1962_v2 }
 0x382   : > { %v1929_v33 = vunpack.i.h.bf16 %v3141_v10  ;;  %v1928_v52 = vunpack.i.l.bf16 %v3141_v10 }
 0x383   : > { %v3223_v63 = vsel %vm3667_vm6, %v1963_v24, %v1964_v0  ;;  %vm3682_vm6 = vmmov %vm3673_vm12 }
 0x384   : > { %v3168_v27 = vsel %vm414_vm0, %v1929_v33, %v1933_v45  ;;  %v3261_v24 = vsel %vm414_vm0, %v1928_v52, %v1929_v33  ;;  %vm3676_vm0 = vmmov %vm3674_vm11 }
 0x388   : > { %v3146_v48 = vpop.permute.xlu2 %1976  ;;  %v3148_v16 = vpop.permute.xlu0 %1921 }
 0x389   : > { %v1924_v40 = vunpack.i.h.bf16 %v3148_v16  ;;  %v1923_v58 = vunpack.i.l.bf16 %v3148_v16  ;;  %v3153_v42 = vpop.permute.xlu1 %1941  ;;  %v1978_v1 = vunpack.i.l.bf16 %v3146_v48  ;;  %v1979_v57 = vunpack.i.h.bf16 %v3146_v48 }
 0x38a   : > { %v1943_v19 = vunpack.i.l.bf16 %v3153_v42  ;;  %v2140_v16 = vpack.i.bf16 %v1934_v29, %v3158_v36 }
 0x38b   : > { %v3163_v6 = vsel %vm399_vm1, %v1923_v58, %v1924_v40  ;;  %v3173_v12 = vsel %vm399_vm1, %v1919_v32, %v1923_v58  ;;  %v3236_v49 = vsel %vm3670_vm3, %v1978_v1, %v1979_v57 }
 0x390   : > { %v3179_v23 = vpop.permute.xlu2 %1991  ;;  %v3181_v43 = vpop.permute.xlu0 %1936 }
 0x391   : > { %v3634_v39 = vunpack.i.h.bf16 %v3181_v43  ;;  %v3185_v20 = vpop.permute.xlu1 %1956  ;;  %v1993_v22 = vunpack.i.l.bf16 %v3179_v23  ;;  %v1938_v35 = vunpack.i.l.bf16 %v3181_v43 }
 0x392   : > { %v1958_v26 = vunpack.i.l.bf16 %v3185_v20 }
 0x393   : > { %v3190_v37 = vsel %vm3661_vm13, %v3634_v39, %v1943_v19  ;;  %vm3677_vm13 = vmmov %vm3676_vm0 }
 0x398   : > { %v3192_v62 = vpop.permute.xlu2 %2006  ;;  %v1952_v4 = vpop.permute.xlu0 %1951 }
 0x399   : > { %v1954_v11 = vunpack.i.h.bf16 %v1952_v4  ;;  %v1953_v14 = vunpack.i.l.bf16 %v1952_v4  ;;  %v1972_v44 = vpop.permute.xlu1 %1971 }
 0x39a   : > { %v1974_v56 = vunpack.i.h.bf16 %v1972_v44  ;;  %v1973_v46 = vunpack.i.l.bf16 %v1972_v44  ;;  %v1944_v44 = vunpack.i.h.bf16 %v3153_v42 }
 0x39b   : > { %v3196_v8 = vsel %vm3662_vm15, %v1953_v14, %v1954_v11  ;;  %v3201_v13 = vsel %vm3663_vm2, %v1954_v11, %v1958_v26  ;;  %vm3678_vm15 = vcmask 1039360  }
 0x39c   : > { %v2060_v25 = vpack.i.bf16 %v3201_v13, %v3196_v8  ;;  %v3215_v5 = vsel %vm3665_vm4, %v1973_v46, %v1974_v56  ;;  %v3218_v31 = vsel %vm3666_vm5, %v1974_v56, %v1978_v1  ;;  %v1948_v56 = vunpack.i.l.bf16 %v3135_v51  ;;  %vm3679_vm2 = vmmov %vm3678_vm15 }
 0x39d   : > { %v2070_v2 = vpack.i.bf16 %v3218_v31, %v3215_v5  ;;  %v3274_v10 = vsel %vm3675_vm10, %v1943_v19, %v1944_v44  ;;  %v1959_v44 = vunpack.i.h.bf16 %v3185_v20  ;;  %vm3680_vm4 = vcmask 826368  }
 0x39e   : > { %2061 = vrot.lane.b32.xlu1 %v2060_v25, %s3664_s17  ;;  %v1949_v25 = vunpack.i.h.bf16 %v3135_v51  ;;  %vm3681_vm5 = vcmask 621568   ;;  %vm3691_vm10 = vcmask 646144  }
 0x39f   : > { %vm3685_vm3 = vmmov %vm3681_vm5 }
 0x3a0   : > { %v3208_v59 = vpop.permute.xlu2 %2016  ;;  %v3210_v61 = vpop.permute.xlu0 %1966  ;;  %v3277_v33 = vsel %vm3676_vm0, %v1948_v56, %v1949_v25  ;;  %vm3692_vm0 = vcmask 818176  }
 0x3a1   : > { %v1969_v50 = vunpack.i.h.bf16 %v3210_v61  ;;  %v1968_v18 = vunpack.i.l.bf16 %v3210_v61  ;;  %v1987_v21 = vpop.permute.xlu1 %1986 }
 0x3a2   : > { %v1989_v28 = vunpack.i.h.bf16 %v1987_v21  ;;  %v1988_v54 = vunpack.i.l.bf16 %v1987_v21 }
 0x3a3   : > { %v3228_v7 = vsel %vm3668_vm7, %v1968_v18, %v1969_v50  ;;  %v3231_v41 = vsel %vm3669_vm8, %v1964_v0, %v1968_v18  ;;  %vm3683_vm7 = vmmov %vm3682_vm6 }
 0x3a4   : > { %v2065_v17 = vpack.i.bf16 %v3231_v41, %v3223_v63  ;;  %v1201_v58 = vsel %vm3671_vm9, %v1988_v54, %v1989_v28  ;;  %v1202_v4 = vsel %vm3672_vm14, %v1989_v28, %v1993_v22  ;;  %vm3684_vm8 = vmmov %vm3681_vm5  ;;  %vm3688_vm14 = vcmask 629760  }
 0x3a5   : > { %v2075_v14 = vpack.i.bf16 %v1202_v4, %v1201_v58  ;;  %v1909_v58 = vunpack.i.h.bf16 %v3139_v60  ;;  %v1908_v4 = vunpack.i.l.bf16 %v3139_v60 }
 0x3a6   : > { %2066 = vrot.lane.b32.xlu0 %v2065_v17, %s3664_s17  ;;  %2071 = vrot.lane.b32.xlu1 %v2070_v2, %s3664_s17  ;;  %v2100_v17 = vpack.i.bf16 %v3168_v27, %v3261_v24 }
 0x3a7   : > { %2076 = vrot.lane.b32.xlu2 %v2075_v14, %s3664_s17  ;;  %v3300_v2 = vsel %vm3678_vm15, %v1908_v4, %v1909_v58  ;;  %vm3694_vm15 = vmmov %vm3691_vm10 }
 0x3a8   : > { %v2032_v46 = vpop.permute.xlu2 %2031  ;;  %v3256_v0 = vpop.permute.xlu0 %1981 }
 0x3a9   : > { %v2034_v1 = vunpack.i.h.bf16 %v2032_v46  ;;  %v2033_v18 = vunpack.i.l.bf16 %v2032_v46  ;;  %v1984_v21 = vunpack.i.h.bf16 %v3256_v0  ;;  %v1983_v42 = vunpack.i.l.bf16 %v3256_v0  ;;  %v2002_v28 = vpop.permute.xlu1 %2001 }
 0x3aa   : > { %v2004_v56 = vunpack.i.h.bf16 %v2002_v28  ;;  %v2003_v46 = vunpack.i.l.bf16 %v2002_v28  ;;  %v3310_v28 = vsel %vm3680_vm4, %v1958_v26, %v1959_v44 }
 0x3ab   : > { %v3266_v54 = vsel %vm3673_vm12, %v2033_v18, %v2034_v1  ;;  %v3271_v51 = vsel %vm3674_vm11, %v1983_v42, %v1984_v21  ;;  %v3280_v52 = vsel %vm3677_vm13, %v1949_v25, %v1983_v42  ;;  %v1913_v25 = vunpack.i.l.bf16 %v3137_v47  ;;  %vm3689_vm12 = vmmov %vm3688_vm14 }
 0x3ac   : > { %v2085_v19 = vpack.i.bf16 %v3280_v52, %v3277_v33  ;;  %v1918_v1 = vunpack.i.l.bf16 %v3131_v9  ;;  %v1188_v26 = vsel %vm3683_vm7, %v2004_v56, %v2033_v18  ;;  %v2110_v9 = vpack.i.bf16 %v1959_v44, %v3310_v28 }
 0x3ad   : > { %v2009_v18 = vunpack.i.h.bf16 %v3192_v62  ;;  %vm3690_vm11 = vcmask 654336   ;;  %vm3699_vm7 = vcmask 1014784  }
 0x3ae   : > { %2101 = vrot.lane.b32.xlu1 %v2100_v17, %s3664_s17  ;;  %2086 = vrot.lane.b32.xlu0 %v2085_v19, %s3664_s17  ;;  %v3305_v17 = vsel %vm3679_vm2, %v1909_v58, %v1913_v25  ;;  %v3319_v4 = vsel %vm399_vm1, %v1918_v1, %v1919_v32  ;;  %vm3686_vm1 = vmmov %vm3671_vm9  ;;  %vm3687_vm9 = vcmask 637952  }
 0x3af   : > { %2081 = vrot.lane.b32.xlu2 %v3061_v3, %s3660_s29  ;;  %v2105_v20 = vpack.i.bf16 %v3305_v17, %v3300_v2  ;;  %vm3693_vm13 = vmmov %vm3690_vm11  ;;  %s2200_s29 = sshra.s32 %s1493_s15, 4  ;;  %s2201_s29 = int_to_ptr.hbm [resolvable:$true] %s2200_s29 }
 0x3b0   : > { %v1997_v60 = vpop.permute.xlu0 %1996  ;;  %v3314_v45 = vpop.permute.xlu2 %2036  ;;  %vm3695_vm4 = vmmov %vm3687_vm9  ;;  %s2202_s22 = scalar_lea.hbm %s2201_s29, 24  ;;  %p2207_p0 = scmp.lt.s32.totalorder %s2201_s29, %s3595_s5 }
 0x3b1   : > { %v1999_v42 = vunpack.i.h.bf16 %v1997_v60  ;;  %v1998_v53 = vunpack.i.l.bf16 %v1997_v60  ;;  %v2027_v19 = vpop.permute.xlu1 %2026  ;;  %v1187_v60 = vsel %vm3682_vm6, %v2003_v46, %v2004_v56  ;;  %v1994_v46 = vunpack.i.h.bf16 %v3179_v23  ;;  %vm3697_vm6 = vmmov %vm3695_vm4  ;;  %p2203_p6 = scmp.ne.s32.totalorder %s2201_s29, %s2202_s22  ;;  %p2208_p1 = scmp.lt.s32.totalorder %s2206_s25, %s2202_s22 }
 0x3b2   : > { %v2029_v11 = vunpack.i.h.bf16 %v2027_v19  ;;  %v2028_v34 = vunpack.i.l.bf16 %v2027_v19  ;;  %v2008_v56 = vunpack.i.l.bf16 %v3192_v62  ;;  %v2120_v62 = vpack.i.bf16 %v1979_v57, %v3236_v49 }
 0x3b3   : > { %v1173_v14 = vsel %vm3681_vm5, %v1998_v53, %v1999_v42  ;;  %v2090_v53 = vpack.i.bf16 %v3173_v12, %v3319_v4  ;;  %v2019_v23 = vunpack.i.h.bf16 %v3208_v59  ;;  %v2038_v48 = vunpack.i.l.bf16 %v3314_v45  ;;  %vm3696_vm5 = vmmov %vm3689_vm12  ;;  %p2204_p9 = pnand %p2203_p6, %p2359_p11  ;;  %p2209_p3 = por %p2208_p1, %p2207_p0 }
 0x3b4   : > { %v1351_v58 = vpack.c.bf16 %v1187_v60, %v1173_v14  ;;  %v1174_v39 = vsel %vm3684_vm8, %v1999_v42, %v2028_v34  ;;  %v3326_v19 = vsel %vm3685_vm3, %v2028_v34, %v2029_v11  ;;  %vm3700_vm8 = vmmov %vm3690_vm11 }
 0x3b5   : > { %v1352_v32 = vpack.c.bf16 %v1188_v26, %v1174_v39  ;;  %v1353_v14 = vpack.c.bf16 %v3266_v54, %v3326_v19  ;;  %v1203_v39 = vsel %vm3686_vm1, %v1993_v22, %v1994_v46  ;;  %v2018_v22 = vunpack.i.l.bf16 %v3208_v59  ;;  %vm3701_vm3 = vmmov %vm3691_vm10  ;;  %p2205_p13 = pneg %p2204_p9 }
 0x3b6   : > { %1392 = vmatpush.bf16.msrb.mxu0 %v1351_v58  ;;  %2106 = vrot.lane.b32.xlu1 %v2105_v20, %s3664_s17  ;;  %v1145_v58 = vsel %vm3687_vm9, %v2008_v56, %v2009_v18  ;;  %v2039_v56 = vunpack.i.h.bf16 %v3314_v45  ;;  %vm3702_vm1 = vmmov %vm3692_vm0  ;;  %vm3703_vm9 = vcmask 449536  }
 0x3b7   : > { %2091 = vrot.lane.b32.xlu0 %v2090_v53, %s3664_s17  ;;  %1418 = vmatpush.bf16.msra.mxu3 %v1352_v32  ;;  %p2210_p4 = pnand %p2209_p3, %p2205_p13 }
 0x3b8   : > { %2111 = vrot.lane.b32.xlu2 %v2110_v9, %s3664_s17  ;;  %v2012_v34 = vpop.permute.xlu0 %2011  ;;  %v2125_v9 = vpack.i.bf16 %v1994_v46, %v1203_v39  ;;  %v2057_v32 = vpop.permute.xlu2 %2056 }
 0x3b9   : > { %v2014_v11 = vunpack.i.h.bf16 %v2012_v34  ;;  %v2013_v1 = vunpack.i.l.bf16 %v2012_v34  ;;  %v2047_v44 = vpop.permute.xlu1 %2046  ;;  %v2059_v34 = vunpack.i.h.bf16 %v2057_v32  ;;  %v2058_v46 = vunpack.i.l.bf16 %v2057_v32 }
 0x3ba   : > { %v2049_v42 = vunpack.i.h.bf16 %v2047_v44  ;;  %v2048_v60 = vunpack.i.l.bf16 %v2047_v44  ;;  %v1103_v32 = vsel %vm3692_vm0, %v2038_v48, %v2039_v56 }
 0x3bb   : > { %v1159_v20 = vsel %vm3688_vm14, %v2013_v1, %v2014_v11  ;;  %vm3705_vm14 = vmmov %vm3703_vm9 }
 0x3bc   : > { %v1348_v26 = vpack.c.bf16 %v1159_v20, %v1145_v58  ;;  %v3348_v53 = vsel %vm3689_vm12, %v2048_v60, %v2049_v42  ;;  %v1117_v20 = vsel %vm3690_vm11, %v2018_v22, %v2019_v23  ;;  %v3374_v22 = vsel %vm3694_vm15, %v2058_v46, %v2059_v34  ;;  %vm3706_vm12 = vmmov %vm3703_vm9 }
 0x3bd   : > { %vm3707_vm11 = vcmask 1043456   ;;  %vm3712_vm15 = vmmov %vm3703_vm9 }
 0x3be   : > { %1393 = vmatpush.bf16.msrb.mxu0 %v1348_v26  ;;  %2121 = vrot.lane.b32.xlu1 %v2120_v62, %s3664_s17  ;;  %v2135_v62 = vpack.i.bf16 %v1924_v40, %v3163_v6 }
 0x3bf   : > { %2096 = vrot.lane.b32.xlu0 %v3069_v15, %s3664_s17  ;;  %v1914_v15 = vunpack.i.h.bf16 %v3137_v47  ;;  %v1339_v47 = vpack.c.bf16 %v3215_v5, %v3223_v63 }
 0x3c0   : > { %2126 = vrot.lane.b32.xlu2 %v2125_v9, %s3664_s17  ;;  %v2022_v57 = vpop.permute.xlu0 %2021  ;;  %v2115_v9 = vpack.i.bf16 %v1969_v50, %v3228_v7  ;;  %v1342_v50 = vpack.c.bf16 %v1103_v32, %v3196_v8 }
 0x3c1   : > { %v2024_v1 = vunpack.i.h.bf16 %v2022_v57  ;;  %v2023_v39 = vunpack.i.l.bf16 %v2022_v57  ;;  %v2052_v44 = vpop.permute.xlu1 %2051  ;;  %v3388_v48 = vsel %vm3679_vm2, %v1913_v25, %v1914_v15  ;;  %vm3714_vm2 = vmmov %vm3703_vm9 }
 0x3c2   : > { %v2054_v42 = vunpack.i.h.bf16 %v2052_v44  ;;  %v2053_v58 = vunpack.i.l.bf16 %v2052_v44  ;;  %v1160_v44 = vsel %vm3696_vm5, %v2014_v11, %v2048_v60  ;;  %v3698_v11 = vunpack.i.h.bf16 %v3181_v43  ;;  %v3418_v43 = vld [vmem:[%s3593_s3] sm:$0xff]  ;;  %vm3716_vm5 = vmmov %vm3714_vm2 }
 0x3c3   : > { %v1131_v59 = vsel %vm3691_vm10, %v2023_v39, %v2024_v1  ;;  %v1132_v5 = vsel %vm3701_vm3, %v2024_v1, %v2058_v46  ;;  %vm3709_vm10 = vmmov %vm3707_vm11  ;;  %vm3720_vm3 = vcmask 588800  }
 0x3c4   : > { %v1345_v26 = vpack.c.bf16 %v1131_v59, %v1117_v20  ;;  %v3371_v57 = vsel %vm3693_vm13, %v2053_v58, %v2054_v42  ;;  %v2150_v20 = vpack.i.bf16 %v1914_v15, %v3388_v48  ;;  %v2130_v59 = vpack.i.bf16 %v1984_v21, %v3271_v51  ;;  %vm3710_vm0 = vmmov %vm3709_vm10 }
 0x3c5   : > { %v1347_v40 = vpack.c.bf16 %v3374_v22, %v3371_v57  ;;  %v1033_v60 = vsel %vm3699_vm7, %v1938_v35, %v3698_v11  ;;  %v1118_v15 = vsel %vm3700_vm8, %v2019_v23, %v2053_v58  ;;  %v1333_v21 = vpack.c.bf16 %v3261_v24, %v3319_v4  ;;  %vm3711_vm13 = vmmov %vm3703_vm9 }
 0x3c6   : > { %1394 = vmatpush.bf16.msrb.mxu0 %v1345_v26  ;;  %2136 = vrot.lane.b32.xlu1 %v2135_v62, %s3664_s17  ;;  %v1336_v63 = vpack.c.bf16 %v3277_v33, %v1033_v60  ;;  %v1346_v0 = vpack.c.bf16 %v1132_v5, %v1118_v15  ;;  %v1375_v23 = vunpack.c.l.b16 %v3418_v43  ;;  %v1330_v33 = vpack.c.bf16 %v3300_v2, %v3065_v30  ;;  %vm3718_vm7 = vmmov %vm3714_vm2 }
 0x3c7   : > { %2116 = vrot.lane.b32.xlu0 %v2115_v9, %s3664_s17  ;;  %v1331_v60 = vpack.c.bf16 %v3305_v17, %v3058_v55  ;;  %vm3719_vm8 = vmmov %vm3714_vm2 }
 0x3c8   : > { %2141 = vrot.lane.b32.xlu2 %v2140_v16, %s3664_s17  ;;  %v2042_v61 = vpop.permute.xlu0 %2041  ;;  %v3427_v46 = vpack.c.b16 %v1375_v23, %v1375_v23 }
 0x3c9   : > { %v2044_v29 = vunpack.i.h.bf16 %v2042_v61  ;;  %v2043_v34 = vunpack.i.l.bf16 %v2042_v61  ;;  %v3704_v61 = vpack.c.bf16 %v3218_v31, %v3231_v41 }
 0x3ca   : > { %1395 = vmatpush.bf16.msrb.mxu0 %v1342_v50 }
 0x3cb   : > { %v1146_v39 = vsel %vm3695_vm4, %v2009_v18, %v2043_v34  ;;  %v3394_v42 = vsel %vm3697_vm6, %v2043_v34, %v2044_v29  ;;  %v247_v18 = vld [vmem:[%s3594_s4] sm:$0xff]  ;;  %v3708_v34 = vpack.c.bf16 %v3280_v52, %v3190_v37  ;;  %v3713_v37 = vpack.c.bf16 %v3168_v27, %v3173_v12  ;;  %vm3715_vm4 = vmmov %vm3714_vm2 }
 0x3cc   : > { %v1349_v8 = vpack.c.bf16 %v1160_v44, %v1146_v39  ;;  %v1350_v25 = vpack.c.bf16 %v3348_v53, %v3394_v42  ;;  %vm3717_vm6 = vmmov %vm3714_vm2 }
 0x3ce   : > { %1396 = vmatpush.bf16.msrb.mxu0 %v1339_v47  ;;  %1419 = vmatpush.bf16.msra.mxu3 %v1349_v8 }
 0x3cf   : > { %2131 = vrot.lane.b32.xlu0 %v2130_v59, %s3664_s17  ;;  %2151 = vrot.lane.b32.xlu1 %v2150_v20, %s3664_s17 }
 0x3d0   : > { %1371 = vperm.xlu2 %1904, %v247_v18  }
 0x3d2   : > { %1397 = vmatpush.bf16.msrb.mxu0 %v1336_v63  ;;  %1420 = vmatpush.bf16.msra.mxu3 %v1346_v0 }
 0x3d6   : > { %1398 = vmatpush.bf16.msrb.mxu0 %v1333_v21 }
 0x3d7   : > { %2146 = vrot.lane.b32.xlu0 %v3061_v3, %s3664_s17 }
 0x3da   : > { %1399 = vmatpush.bf16.msrb.mxu0 %v1330_v33 }
 0x3dd   : > { %1400 = vmatmul.bf16.vlgmr.msrb.gmra.mxu0 %v3427_v46 }
 0x401   : > { %v3430_v1 = vpop.permute.xlu2 %2076 }
 0x402   : > { %v2079_v15 = vunpack.i.h.bf16 %v3430_v1  ;;  %v2078_v5 = vunpack.i.l.bf16 %v3430_v1 }
 0x404   : > { %v1288_v27 = vsel %vm3714_vm2, %v2078_v5, %v2079_v15 }
 0x409   : > { %v3432_v58 = vpop.permute.xlu2 %2081 }
 0x40a   : > { %v2083_v24 = vunpack.i.l.bf16 %v3432_v58 }
 0x40c   : > { %v1104_v3 = vsel %vm3702_vm1, %v2039_v56, %v2083_v24  ;;  %vm3721_vm1 = vmmov %vm3714_vm2 }
 0x40d   : > { %v1343_v4 = vpack.c.bf16 %v1104_v3, %v3201_v13 }
 0x40f   : > { %1421 = vmatpush.bf16.msra.mxu3 %v1343_v4 }
 0x410   : > { %v2062_v30 = vpop.permute.xlu1 %2061 }
 0x411   : > { %v2064_v2 = vunpack.i.h.bf16 %v2062_v30  ;;  %v2063_v62 = vunpack.i.l.bf16 %v2062_v30 }
 0x412   : > { %v2112_v26 = vpop.permute.xlu2 %2111 }
 0x413   : > { %v2114_v9 = vunpack.i.h.bf16 %v2112_v26  ;;  %v2113_v32 = vunpack.i.l.bf16 %v2112_v26  ;;  %v1300_v16 = vsel %vm3703_vm9, %v2063_v62, %v2064_v2  ;;  %1422 = vmatpush.bf16.msra.mxu3 %v3704_v61  ;;  %vm3722_vm9 = vmmov %vm3721_vm1 }
 0x414   : > { %v1366_v50 = vpack.c.bf16 %v1300_v16, %v1300_v16 }
 0x415   : > { %v1301_v45 = vsel %vm3705_vm14, %v2064_v2, %v2113_v32  ;;  %v1302_v56 = vsel %vm3706_vm12, %v2113_v32, %v2114_v9  ;;  %vm3723_vm14 = vmmov %vm3721_vm1 }
 0x416   : > { %v1384_v13 = vsel %vm3707_vm11, %v1366_v50, 0  ;;  %v1367_v35 = vpack.c.bf16 %v1301_v45, %v1301_v45  ;;  %v1368_v29 = vpack.c.bf16 %v1302_v56, %v1302_v56  ;;  %v1376_v45 = vunpack.c.h.b16 %v3418_v43  ;;  %vm3724_vm12 = vmmov %vm3721_vm1 }
 0x417   : > { %1408 = vmatpush.bf16.msrb.mxu2 %v1384_v13  ;;  %1423 = vmatpush.bf16.msra.mxu3 %v3708_v34  ;;  %vm3725_vm11 = vcmask 818176  }
 0x418   : > { %v1387_v39 = vsel %vm3709_vm10, %v1367_v35, 0  ;;  %v1390_v44 = vsel %vm3710_vm0, %v1368_v29, 0  ;;  %v2067_v31 = vpop.permute.xlu0 %2066  ;;  %v2072_v41 = vpop.permute.xlu1 %2071  ;;  %vm3726_vm10 = vmmov %vm3721_vm1 }
 0x419   : > { %1434 = vmatpush.bf16.msra.mxu1 %v1387_v39  ;;  %1460 = vmatpush.bf16.msra.mxu0 %v1390_v44  ;;  %v2069_v20 = vunpack.i.h.bf16 %v2067_v31  ;;  %v2068_v47 = vunpack.i.l.bf16 %v2067_v31  ;;  %v2074_v8 = vunpack.i.h.bf16 %v2072_v41  ;;  %v2073_v59 = vunpack.i.l.bf16 %v2072_v41  ;;  %vm3727_vm0 = vmmov %vm3721_vm1 }
 0x41a   : > { %v3496_v39 = vpack.c.b16 %v1376_v45, %v1376_v45  ;;  %v2127_v44 = vpop.permute.xlu2 %2126  ;;  %vm3730_vm2 = vmmov %vm3727_vm0 }
 0x41b   : > { %v1294_v18 = vsel %vm3711_vm13, %v2068_v47, %v2069_v20  ;;  %v1297_v11 = vsel %vm3712_vm15, %v2073_v59, %v2074_v8  ;;  %1424 = vmatpush.bf16.msra.mxu3 %v3713_v37  ;;  %v2084_v47 = vunpack.i.h.bf16 %v3432_v58  ;;  %vm3728_vm13 = vmmov %vm3727_vm0 }
 0x41c   : > { %v1363_v52 = vpack.c.bf16 %v1297_v11, %v1294_v18  ;;  %vm3729_vm15 = vmmov %vm3727_vm0 }
 0x41d   : > { %v1105_v5 = vsel %vm3725_vm11, %v2083_v24, %v2084_v47 }
 0x41e   : > { %1409 = vmatpush.bf16.msrb.mxu2 %v1363_v52 }
 0x41f   : > { %1425 = vmatpush.bf16.msra.mxu3 %v1331_v60 }
 0x420   : > { %v3462_v63 = vpop.permute.xlu1 %2101  ;;  %v3464_v0 = vpop.permute.xlu0 %2086 }
 0x421   : > { %v2089_v21 = vunpack.i.h.bf16 %v3464_v0  ;;  %v2088_v23 = vunpack.i.l.bf16 %v3464_v0  ;;  %v2104_v17 = vunpack.i.h.bf16 %v3462_v63  ;;  %v2103_v33 = vunpack.i.l.bf16 %v3462_v63 }
 0x422   : > { %1426 = vmatmul.bf16.vlgmr.msra.gmra.mxu3 %v3427_v46  ;;  %v2142_v53 = vpop.permute.xlu2 %2141 }
 0x423   : > { %v1291_v55 = vsel %vm3715_vm4, %v2088_v23, %v2089_v21  ;;  %v1285_v26 = vsel %vm3717_vm6, %v2103_v33, %v2104_v17  ;;  %v2129_v23 = vunpack.i.h.bf16 %v2127_v44  ;;  %v2144_v33 = vunpack.i.h.bf16 %v2142_v53  ;;  %vm3731_vm4 = vmmov %vm3727_vm0 }
 0x424   : > { %v1360_v12 = vpack.c.bf16 %v1291_v55, %v1288_v27  ;;  %v2128_v27 = vunpack.i.l.bf16 %v2127_v44  ;;  %vm3734_vm6 = vmmov %vm3727_vm0 }
 0x426   : > { %1410 = vmatpush.bf16.msrb.mxu2 %v1360_v12  ;;  %v1289_v58 = vsel %vm3726_vm10, %v2079_v15, %v2128_v27  ;;  %v1290_v24 = vsel %vm3727_vm0, %v2128_v27, %v2129_v23 }
 0x428   : > { %v3477_v3 = vpop.permute.xlu1 %2106 }
 0x429   : > { %v2092_v4 = vpop.permute.xlu0 %2091  ;;  %v2109_v32 = vunpack.i.h.bf16 %v3477_v3  ;;  %v2108_v16 = vunpack.i.l.bf16 %v3477_v3 }
 0x42a   : > { %v2094_v30 = vunpack.i.h.bf16 %v2092_v4  ;;  %v2093_v2 = vunpack.i.l.bf16 %v2092_v4  ;;  %v2143_v4 = vunpack.i.l.bf16 %v2142_v53  ;;  %v1372_v44 = vpop.permute.xlu2 %1371 }
 0x42b   : > { %v1279_v29 = vsel %vm3719_vm8, %v2108_v16, %v2109_v32  ;;  %vm3737_vm8 = vmmov %vm3727_vm0 }
 0x42c   : > { %v1282_v62 = vsel %vm3716_vm5, %v2093_v2, %v2094_v30  ;;  %vm3733_vm5 = vmmov %vm3727_vm0 }
 0x42d   : > { %v1357_v9 = vpack.c.bf16 %v1285_v26, %v1282_v62  ;;  %v1286_v0 = vsel %vm3733_vm5, %v2104_v17, %v2143_v4 }
 0x42f   : > { %1411 = vmatpush.bf16.msrb.mxu2 %v1357_v9  ;;  %v3732_v9 = vpack.c.bf16 %v3236_v49, %v3228_v7 }
 0x430   : > { %v2122_v50 = vpop.permute.xlu1 %2121 }
 0x431   : > { %v3485_v61 = vpop.permute.xlu0 %2096  ;;  %v2124_v31 = vunpack.i.h.bf16 %v2122_v50  ;;  %v2123_v41 = vunpack.i.l.bf16 %v2122_v50 }
 0x432   : > { %v2099_v56 = vunpack.i.h.bf16 %v3485_v61  ;;  %v2098_v13 = vunpack.i.l.bf16 %v3485_v61 }
 0x433   : > { %v1298_v52 = vsel %vm3722_vm9, %v2074_v8, %v2123_v41  ;;  %v1299_v19 = vsel %vm3724_vm12, %v2123_v41, %v2124_v31  ;;  %vm3741_vm9 = vcmask 588800  }
 0x434   : > { %v1276_v35 = vsel %vm3718_vm7, %v2098_v13, %v2099_v56  ;;  %vm3736_vm7 = vmmov %vm3727_vm0 }
 0x435   : > { %v1354_v34 = vpack.c.bf16 %v1279_v29, %v1276_v35  ;;  %v3735_v35 = vpack.c.bf16 %v3271_v51, %v3274_v10  ;;  %v3740_v51 = vpack.c.bf16 %v3158_v36, %v3163_v6  ;;  %v1332_v10 = vpack.c.bf16 %v3388_v48, %v3056_v38 }
 0x437   : > { %1412 = vmatpush.bf16.msrb.mxu2 %v1354_v34 }
 0x438   : > { %v2137_v11 = vpop.permute.xlu1 %2136 }
 0x439   : > { %v2117_v43 = vpop.permute.xlu0 %2116  ;;  %v2138_v8 = vunpack.i.l.bf16 %v2137_v11 }
 0x43a   : > { %v2119_v59 = vunpack.i.h.bf16 %v2117_v43  ;;  %v2118_v18 = vunpack.i.l.bf16 %v2117_v43  ;;  %1574 = vmatmul.msk.bf16.vlgmr.msrb.gmra.mxu2 %vm3720_vm3, %v3496_v39  ;;  %vm3738_vm3 = vmmov %vm3727_vm0 }
 0x43b   : > { %1444 = vmatpush.bf16.msra.mxu2 %v1353_v14  ;;  %v1283_v62 = vsel %vm3730_vm2, %v2094_v30, %v2138_v8 }
 0x43c   : > { %v1295_v37 = vsel %vm3721_vm1, %v2069_v20, %v2118_v18  ;;  %v1296_v54 = vsel %vm3723_vm14, %v2118_v18, %v2119_v59  ;;  %v2139_v20 = vunpack.i.h.bf16 %v2137_v11  ;;  %v1358_v50 = vpack.c.bf16 %v1286_v0, %v1283_v62  ;;  %vm3739_vm1 = vmmov %vm3727_vm0 }
 0x43d   : > { %v1364_v14 = vpack.c.bf16 %v1298_v52, %v1295_v37  ;;  %v1365_v60 = vpack.c.bf16 %v1299_v19, %v1296_v54  ;;  %vm3742_vm14 = vmmov %vm3741_vm9 }
 0x43e   : > { %v1284_v1 = vsel %vm3731_vm4, %v2138_v8, %v2139_v20 }
 0x43f   : > { %1445 = vmatpush.bf16.msra.mxu2 %v1350_v25  ;;  %1435 = vmatpush.bf16.msra.mxu1 %v1364_v14  ;;  %v1344_v25 = vpack.c.bf16 %v1105_v5, %v3310_v28 }
 0x440   : > { %1461 = vmatpush.bf16.msra.mxu0 %v1365_v60 }
 0x441   : > { %v2132_v42 = vpop.permute.xlu0 %2131  ;;  %v2152_v28 = vpop.permute.xlu1 %2151 }
 0x442   : > { %v2134_v55 = vunpack.i.h.bf16 %v2132_v42  ;;  %v2133_v12 = vunpack.i.l.bf16 %v2132_v42  ;;  %v2154_v15 = vunpack.i.h.bf16 %v2152_v28  ;;  %v2153_v26 = vunpack.i.l.bf16 %v2152_v28 }
 0x443   : > { %1446 = vmatpush.bf16.msra.mxu2 %v1347_v40 }
 0x444   : > { %v1292_v57 = vsel %vm3728_vm13, %v2089_v21, %v2133_v12  ;;  %v1293_v22 = vsel %vm3729_vm15, %v2133_v12, %v2134_v55  ;;  %v1287_v21 = vsel %vm3734_vm6, %v2143_v4, %v2144_v33  ;;  %v1280_v49 = vsel %vm3737_vm8, %v2109_v32, %v2153_v26 }
 0x445   : > { %v1361_v40 = vpack.c.bf16 %v1292_v57, %v1289_v58  ;;  %v1362_v2 = vpack.c.bf16 %v1293_v22, %v1290_v24  ;;  %v1359_v45 = vpack.c.bf16 %v1287_v21, %v1284_v1  ;;  %v1281_v17 = vsel %vm3739_vm1, %v2153_v26, %v2154_v15 }
 0x447   : > { %1447 = vmatpush.bf16.msra.mxu2 %v1344_v25  ;;  %1436 = vmatpush.bf16.msra.mxu1 %v1361_v40 }
 0x448   : > { %1462 = vmatpush.bf16.msra.mxu0 %v1362_v2 }
 0x449   : > { %v2147_v16 = vpop.permute.xlu0 %2146 }
 0x44a   : > { %v2149_v30 = vunpack.i.h.bf16 %v2147_v16  ;;  %v2148_v13 = vunpack.i.l.bf16 %v2147_v16 }
 0x44b   : > { %1448 = vmatpush.bf16.msra.mxu2 %v3732_v9  ;;  %1437 = vmatpush.bf16.msra.mxu1 %v1358_v50 }
 0x44c   : > { %1463 = vmatpush.bf16.msra.mxu0 %v1359_v45  ;;  %v1277_v7 = vsel %vm3736_vm7, %v2099_v56, %v2148_v13  ;;  %v1278_v63 = vsel %vm3738_vm3, %v2148_v13, %v2149_v30 }
 0x44d   : > { %v1355_v29 = vpack.c.bf16 %v1280_v49, %v1277_v7  ;;  %v1356_v34 = vpack.c.bf16 %v1281_v17, %v1278_v63 }
 0x44f   : > { %1449 = vmatpush.bf16.msra.mxu2 %v3735_v35  ;;  %1438 = vmatpush.bf16.msra.mxu1 %v1355_v29 }
 0x450   : > { %1464 = vmatpush.bf16.msra.mxu0 %v1356_v34 }
 0x452   : > { %1575 = vmatmul.msk.bf16.vlgmr.msra.gmra.mxu1 %vm3741_vm9, %v3496_v39 }
 0x453   : > { %1450 = vmatpush.bf16.msra.mxu2 %v3740_v51  ;;  %1576 = vmatmul.msk.bf16.vlgmr.msra.gmra.mxu0 %vm3742_vm14, %v3496_v39 }
 0x457   : > { %1451 = vmatpush.bf16.msra.mxu2 %v1332_v10 }
 0x45a   : > { %1452 = vmatmul.bf16.vlgmr.msra.gmra.mxu2 %v3427_v46  ;;  %v1401_v3 = vpop.f32.mrf.mxu0 }
 0x45b   : > { %v1402_v36 = vadd.f32 %v1401_v3, %v1372_v44 }
 0x462   : > { %v1403_v32 = vpop.f32.mrf.mxu0 }
 0x4a5   : > { %v1427_v61 = vpop.f32.mrf.mxu3 }
 0x4a6   : > { %v1428_v48 = vadd.f32 %v1427_v61, %v1372_v44 }
 0x4ad   : > { %v1429_v56 = vpop.f32.mrf.mxu3 }
 0x4bd   : > { %v1414_v6 = vpop.f32.mrf.mxu2 }
 0x4be   : > { %v1415_v31 = vadd.f32 %v1414_v6, %v1402_v36 }
 0x4c0   : > { %v1470_v41 = vmax.f32 %v1415_v31, 0.0 }
 0x4c2   : > { %1473 = vst [vmem:[%s242_s10] sm:$0xff] %v1470_v41 }
 0x4c5   : > { %v1416_v38 = vpop.f32.mrf.mxu2 }
 0x4cf   : > { %v1440_v43 = vpop.f32.mrf.mxu1 }
 0x4d0   : > { %v1466_v39 = vpop.f32.mrf.mxu0  ;;  %v1441_v47 = vadd.f32 %v1440_v43, %v1428_v48 }
 0x4d2   : > { %v1471_v59 = vmax.f32 %v1441_v47, 0.0 }
 0x4d4   : > { %1474 = vst [vmem:[%s242_s10 + $0x8] sm:$0xff] %v1471_v59 }
 0x4d7   : > { %v1442_v46 = vpop.f32.mrf.mxu1 }
 0x4d8   : > { %v1468_v18 = vpop.f32.mrf.mxu0 }
 0x4dd   : > { %v1453_v11 = vpop.f32.mrf.mxu2 }
 0x4de   : > { %v1454_v37 = vadd.f32 %v1453_v11, %v1372_v44 }
 0x4e0   : > { %v1467_v52 = vadd.f32 %v1466_v39, %v1454_v37 }
 0x4e2   : > { %v1472_v54 = vmax.f32 %v1467_v52, 0.0 }
 0x4e4   : > { %1475 = vst [vmem:[%s242_s10 + $0x10] sm:$0xff] %v1472_v54 }
 0x4e5   : > { %v1455_v19 = vpop.f32.mrf.mxu2 }
 0x4e6   : > { %2213 = shalt.err (!%p2210_p4)
}
 0x4e7   : > { %1585 = dma.vmem_to_hbm [thread:$0]  (%p2359_p11), %s1491_s13, 384, %s1493_s15, %s1477_s16  }
 0x4e8 PF: > { %s1504_s7 = sand.u32 1, %s2240_s18   ;;  %p3743_p7 = scmp.ge.s32.totalorder %s2252_s21, 2 }
 0x4e9   : > { %s1505_s9 = scalar_lea.sflag [#allocation5], %s1504_s7 }
 0x4ea   : > { %p1592_p5 = pnand %p3743_p7, %p2363_p12 }
 0x4ec   : > { %p1593_p8 = pneg %p1592_p5 }
 0x4ee   : > { %2235 = dma.done.wait (%p1593_p8), %s1505_s9, 384  }
 0x4ef   : > { %2237 = vsyncadd (%p1593_p8), %s1505_s9, 4294966912  ;;  %p18_p10 = scmp.ge.s32.totalorder %s2334_s24, 4   ;;  %s3744_s18 = smov %s2244_s19 }
 0x4f0   : > { %s3745_s19 = smov %s2248_s20  ;;  %s3746_s20 = smov %s2346_s27 }
 0x4f1   : > { %s3747_s21 = smov %s2334_s24  ;;  %20 = sbr.rel (!%p18_p10) target bundleno = 5 (0x5), region = 85 }
 0x4f6   :  { %1511 = vsyncpa [#allocation4], 1 }
 0x4f7   :  { %1513 = vsyncpa [#allocation4 + $0x1], 1 }
 0x4f8   :  { %1514 = vsyncpa [#allocation5], 1 }
 0x4f9   :  { %1516 = vsyncpa [#allocation5 + $0x1], 1 }

</bundles_post_ra>
